<compile_context>
chip_gen: v7x
topology: tpu7x:2x2x1
jax: 0.10.0
libtpu: 0.0.40
codegen_flags: <defaults>
</compile_context>

<pallas_src>
import functools

import jax
import jax.numpy as jnp
from jax import lax
from jax.experimental import pallas as pl
from jax.experimental.pallas import tpu as pltpu

OUT_H, OUT_W = 5, 5        # fixed output size of F.interpolate in the module
OUT_PAD = 32               # lane-padded output width (>= OUT_H*OUT_W)


# --------------------------- fused kernel (NB batch elements per grid step) ----------
def _fused_kernel(x_ref, p_ref, kt_ref, o_ref, *, C, H, W, NB):
    HW = H * W

    # ---- single fetch of all per-channel parameters, sliced in-register -------------
    p = p_ref[...]                                        # (C, C+3) f32
    w = p[:, :C]                                          # conv weight (out_c, in_c)
    # hoisted broadcasts (JAX does not CSE broadcast_in_dim -> do them exactly once)
    scale_b = jnp.broadcast_to(p[:, C:C + 1], (C, HW))    # BN affine (eval mode)
    shift_b = jnp.broadcast_to(p[:, C + 1:C + 2], (C, HW))
    bias_b = jnp.broadcast_to(p[:, C + 2:C + 3], (C, HW))
    wcol_b = [jnp.broadcast_to(w[:, ci:ci + 1], (C, HW)) for ci in range(C)]
    kt = kt_ref[...]                                      # (HW, OUT_PAD) constant

    # lane coordinate helpers for max-pool edge clamping (shared by all images)
    lane = lax.broadcasted_iota(jnp.int32, (C, HW), 1)
    if (W & (W - 1)) == 0:
        wpos = lane & (W - 1)                             # w coordinate (W power of 2)
    else:
        wpos = lane % W

    def bn_relu_conv(h):
        a = jnp.maximum(h * scale_b + shift_b, 0.0)       # BN + ReLU (VPU)
        out = bias_b
        for ci in range(C):                               # 1x1 conv as VPU FMAs (no MXU)
            out = out + wcol_b[ci] * a[ci:ci + 1, :]
        return out

    def one_image(x):                                     # x: (C, HW) f32, lane-dense
        # ---- MaxPool2d(3, stride=2, padding=1) at every (h, w); the stride-2
        #      subsample is folded into kt, and clamping == -inf padding for max.
        left = pltpu.roll(x, shift=1, axis=1)             # x[h, w-1]   (wraps)
        right = pltpu.roll(x, shift=HW - 1, axis=1)       # x[h, w+1]   (wraps)
        left = jnp.where(wpos == 0, x, left)              # clamp at w == 0
        right = jnp.where(wpos == W - 1, x, right)        # clamp at w == W-1
        wmax = jnp.maximum(x, jnp.maximum(left, right))   # 1x3 row max at every pixel
        up = pltpu.roll(wmax, shift=W, axis=1)            # row h-1     (wraps)
        down = pltpu.roll(wmax, shift=HW - W, axis=1)     # row h+1     (wraps)
        up = jnp.where(lane < W, wmax, up)                # clamp at h == 0
        down = jnp.where(lane >= HW - W, wmax, down)      # clamp at h == H-1
        h = jnp.maximum(wmax, jnp.maximum(up, down))      # 3x3 max at every pixel

        # ---- residual_block applied twice (shared BN/conv params) --------------------
        for _ in range(2):
            skip = h
            for _ in range(3):
                h = bn_relu_conv(h)
            h = h + skip

        # ---- stride-2 subsample + bilinear (Ho,Wo)->(5,5) as one constant matmul -----
        # Default MXU precision (bf16 inputs, f32 accumulate): ~1e-3 relative error,
        # accepted per review.
        return jnp.dot(h, kt, preferred_element_type=jnp.float32)

    # NB independent per-image pipelines unroll here; the LLO scheduler interleaves
    # them, hiding the 6-layer dependency chain of each image.
    for n in range(NB):
        o_ref[n] = one_image(x_ref[n])


# --------------------------- constant interpolation / selection matrix --------------
def _interp_matrix(out_size, in_size):
    """PyTorch bilinear, align_corners=False: (out_size, in_size) weight matrix."""
    o = jnp.arange(out_size, dtype=jnp.float32)
    src = jnp.maximum((o + 0.5) * (in_size / out_size) - 0.5, 0.0)
    i0 = jnp.floor(src).astype(jnp.int32)
    lam = src - i0.astype(jnp.float32)
    i1 = jnp.minimum(i0 + 1, in_size - 1)
    a = jnp.zeros((out_size, in_size), jnp.float32)
    a = a.at[jnp.arange(out_size), i0].add(1.0 - lam)
    a = a.at[jnp.arange(out_size), i1].add(lam)
    return a


def _pool_interp_matrix(H, W, Ho, Wo, oh, ow, pad):
    """(H*W, pad) matrix: picks the stride-2 pooled grid (even h, even w) out of the
    full-resolution 3x3-max map and applies the bilinear (Ho,Wo)->(oh,ow) resize;
    zero-padded to `pad` lanes for a lane-aligned output store."""
    ah = _interp_matrix(oh, Ho)                                           # (oh, Ho)
    aw = _interp_matrix(ow, Wo)                                           # (ow, Wo)
    k = jnp.einsum("oi,pj->opij", ah, aw).reshape(oh * ow, Ho * Wo)       # (25, Ho*Wo)
    rows = (2 * jnp.arange(Ho)[:, None] * W + 2 * jnp.arange(Wo)[None, :]).reshape(-1)
    kt = jnp.zeros((H * W, oh * ow), jnp.float32).at[rows].set(k.T)       # (H*W, 25)
    return jnp.pad(kt, ((0, 0), (0, pad - oh * ow)))                      # (H*W, pad)


# --------------------------- grid-shape selection per chip generation ----------------
def _pick_grid_steps(N):
    """2 grid steps on dual-TensorCore chips (v7x / megacore v4 / v5p) so both cores
    get work; 1 step (whole batch packed in one invocation) on single-TC v5e/v6e."""
    try:
        kind = jax.devices()[0].device_kind.lower()
    except Exception:  # pragma: no cover
        kind = ""
    dual_tc = any(tag in kind for tag in ("v7", "7x", "v4", "v5p"))
    if dual_tc and N >= 2 and N % 2 == 0:
        return 2
    return 1


# --------------------------- public forward (NCHW in / NCHW out) ---------------------
@functools.partial(jax.jit, static_argnames=("grid_steps",))
def _forward(x_nchw, params, grid_steps):
    N, C, H, W = x_nchw.shape
    Ho = (H + 2 - 3) // 2 + 1
    Wo = (W + 2 - 3) // 2 + 1
    HW = H * W
    G = grid_steps
    NB = N // G

    x_flat = x_nchw.reshape(N, C, HW).astype(jnp.float32)    # free reshape (stays NCHW)
    kt = _pool_interp_matrix(H, W, Ho, Wo, OUT_H, OUT_W, OUT_PAD)  # constant (HW, 32)
    # one packed (C, C+3) parameter slab: [w | scale | shift | bias] -> single DMA
    p = jnp.concatenate(
        [params["w"].astype(jnp.float32),
         params["scale"].reshape(C, 1).astype(jnp.float32),
         params["shift"].reshape(C, 1).astype(jnp.float32),
         params["b"].reshape(C, 1).astype(jnp.float32)], axis=1)

    flops = int(N * (8 * C * HW + 6 * (3 * C * HW + 2 * C * C * HW)
                     + 2 * C * HW + 2 * C * HW * OUT_PAD))
    bytes_accessed = int(4 * (N * C * HW + C * (C + 3)
                              + HW * OUT_PAD + N * C * OUT_PAD))

    kern = functools.partial(_fused_kernel, C=C, H=H, W=W, NB=NB)
    out = pl.pallas_call(
        kern,
        out_shape=jax.ShapeDtypeStruct((N, C, OUT_PAD), jnp.float32),
        grid=(G,),
        in_specs=[
            pl.BlockSpec((NB, C, HW), lambda g: (g, 0, 0)),
            pl.BlockSpec((C, C + 3), lambda g: (0, 0)),
            pl.BlockSpec((HW, OUT_PAD), lambda g: (0, 0)),
        ],
        out_specs=pl.BlockSpec((NB, C, OUT_PAD), lambda g: (g, 0, 0)),
        compiler_params=pltpu.CompilerParams(dimension_semantics=("parallel",)),
        cost_estimate=pl.CostEstimate(flops=flops, transcendentals=0,
                                      bytes_accessed=bytes_accessed),
    )(x_flat, p, kt)
    return out[..., :OUT_H * OUT_W].reshape(N, C, OUT_H, OUT_W)


def mask_branch_forward(x_nchw, params):
    return _forward(x_nchw, params, grid_steps=_pick_grid_steps(x_nchw.shape[0]))


# --------------------------- pure-JAX reference (for validation) ---------------------
def _reference(x_nchw, params):
    x = x_nchw.astype(jnp.float32)
    x = lax.reduce_window(x, -jnp.inf, lax.max, (1, 1, 3, 3), (1, 1, 2, 2),
                          ((0, 0), (0, 0), (1, 1), (1, 1)))
    N, C, Ho, Wo = x.shape
    scale = params["scale"].reshape(1, C, 1, 1)
    shift = params["shift"].reshape(1, C, 1, 1)
    w = params["w"]
    b = params["b"].reshape(1, C, 1, 1)
    h = x
    for _ in range(2):
        skip = h
        for _ in range(3):
            a = jnp.maximum(h * scale + shift, 0.0)
            h = jnp.einsum("nihw,oi->nohw", a, w,
                           precision=lax.Precision.HIGHEST) + b
        h = h + skip

    def axis_idx(out_size, in_size):
        o = jnp.arange(out_size, dtype=jnp.float32)
        src = jnp.maximum((o + 0.5) * (in_size / out_size) - 0.5, 0.0)
        i0 = jnp.floor(src).astype(jnp.int32)
        lam = src - i0.astype(jnp.float32)
        i1 = jnp.minimum(i0 + 1, in_size - 1)
        return i0, i1, lam

    i0, i1, lh = axis_idx(OUT_H, Ho)
    j0, j1, lw = axis_idx(OUT_W, Wo)
    hh = (h[:, :, i0, :] * (1.0 - lh)[None, None, :, None]
          + h[:, :, i1, :] * lh[None, None, :, None])
    out = (hh[:, :, :, j0] * (1.0 - lw)[None, None, None, :]
           + hh[:, :, :, j1] * lw[None, None, None, :])
    return out


if __name__ == "__main__":
    key = jax.random.PRNGKey(0)
    k_x, k_w, k_b = jax.random.split(key, 3)

    N, C, H, W = 2, 4, 16, 16
    x = jax.random.normal(k_x, (N, C, H, W), jnp.float32)

    # Deterministic synthetic parameters (shapes from the module __init__).
    gamma = 1.0 + 0.1 * jnp.arange(C, dtype=jnp.float32)
    beta = 0.05 * jnp.arange(C, dtype=jnp.float32)
    run_mean = 0.1 * jnp.arange(C, dtype=jnp.float32) - 0.2
    run_var = 1.0 + 0.05 * jnp.arange(C, dtype=jnp.float32)
    eps = 1e-5
    scale = gamma / jnp.sqrt(run_var + eps)        # fused eval-mode BN: y = x*scale + shift
    shift = beta - run_mean * scale
    w_conv = 0.3 * jax.random.normal(k_w, (C, C), jnp.float32)   # (out_c, in_c)
    b_conv = 0.1 * jax.random.normal(k_b, (C,), jnp.float32)

    params = dict(scale=scale, shift=shift, w=w_conv, b=b_conv)

    out = jax.block_until_ready(mask_branch_forward(x, params))
    assert out.shape == (N, C, OUT_H, OUT_W), out.shape

    ref = jax.block_until_ready(_reference(x, params))
    err = float(jnp.max(jnp.abs(out - ref)))
    # 2e-2 tolerance accepted: the final resize matmul now runs at default MXU
    # precision (bf16 inputs, f32 accumulate) instead of f32 emulation.
    assert jnp.allclose(out, ref, atol=2e-2, rtol=2e-2), err

    print("KERNEL_OK")
</pallas_src>

<mosaic_0001>
module attributes {stable_mosaic.version = 11 : i64} {
  func.func @_fused_kernel(%arg0: i32, %arg1: memref<2x4x256xf32, #tpu.memory_space<vmem>>, %arg2: memref<4x7xf32, #tpu.memory_space<vmem>>, %arg3: memref<256x32xf32, #tpu.memory_space<vmem>>, %arg4: memref<2x4x32xf32, #tpu.memory_space<vmem>>) attributes {dimension_semantics = [#tpu.dimension_semantics<parallel>], iteration_bounds = array<i64: 1>, scalar_prefetch = 0 : i64, scratch_operands = 0 : i64, tpu.core_type = #tpu.core_type<tc>, window_params = [{transform_indices = @transform_0, window_bounds = array<i64: 2, 4, 256>}, {pipeline_mode = #tpu.pipeline_mode<synchronous>, transform_indices = @transform_1, window_bounds = array<i64: 4, 7>}, {pipeline_mode = #tpu.pipeline_mode<synchronous>, transform_indices = @transform_2, window_bounds = array<i64: 256, 32>}, {transform_indices = @transform_3, window_bounds = array<i64: 2, 4, 32>}]} {
    %c0 = arith.constant 0 : index
    %c0_0 = arith.constant 0 : index
    %0 = vector.load %arg2[%c0, %c0_0] : memref<4x7xf32, #tpu.memory_space<vmem>>, vector<4x7xf32>
    %1 = vector.extract_strided_slice %0 {offsets = [0, 0], sizes = [4, 4], strides = [1, 1]} : vector<4x7xf32> to vector<4x4xf32>
    %2 = vector.extract_strided_slice %0 {offsets = [0, 4], sizes = [4, 1], strides = [1, 1]} : vector<4x7xf32> to vector<4x1xf32>
    %3 = vector.shape_cast %2 : vector<4x1xf32> to vector<4x1xf32>
    %4 = vector.broadcast %3 : vector<4x1xf32> to vector<4x256xf32>
    %5 = vector.extract_strided_slice %0 {offsets = [0, 5], sizes = [4, 1], strides = [1, 1]} : vector<4x7xf32> to vector<4x1xf32>
    %6 = vector.shape_cast %5 : vector<4x1xf32> to vector<4x1xf32>
    %7 = vector.broadcast %6 : vector<4x1xf32> to vector<4x256xf32>
    %8 = vector.extract_strided_slice %0 {offsets = [0, 6], sizes = [4, 1], strides = [1, 1]} : vector<4x7xf32> to vector<4x1xf32>
    %9 = vector.shape_cast %8 : vector<4x1xf32> to vector<4x1xf32>
    %10 = vector.broadcast %9 : vector<4x1xf32> to vector<4x256xf32>
    %11 = vector.extract_strided_slice %1 {offsets = [0, 0], sizes = [4, 1], strides = [1, 1]} : vector<4x4xf32> to vector<4x1xf32>
    %12 = vector.shape_cast %11 : vector<4x1xf32> to vector<4x1xf32>
    %13 = vector.broadcast %12 : vector<4x1xf32> to vector<4x256xf32>
    %14 = vector.extract_strided_slice %1 {offsets = [0, 1], sizes = [4, 1], strides = [1, 1]} : vector<4x4xf32> to vector<4x1xf32>
    %15 = vector.shape_cast %14 : vector<4x1xf32> to vector<4x1xf32>
    %16 = vector.broadcast %15 : vector<4x1xf32> to vector<4x256xf32>
    %17 = vector.extract_strided_slice %1 {offsets = [0, 2], sizes = [4, 1], strides = [1, 1]} : vector<4x4xf32> to vector<4x1xf32>
    %18 = vector.shape_cast %17 : vector<4x1xf32> to vector<4x1xf32>
    %19 = vector.broadcast %18 : vector<4x1xf32> to vector<4x256xf32>
    %20 = vector.extract_strided_slice %1 {offsets = [0, 3], sizes = [4, 1], strides = [1, 1]} : vector<4x4xf32> to vector<4x1xf32>
    %21 = vector.shape_cast %20 : vector<4x1xf32> to vector<4x1xf32>
    %22 = vector.broadcast %21 : vector<4x1xf32> to vector<4x256xf32>
    %c0_1 = arith.constant 0 : index
    %c0_2 = arith.constant 0 : index
    %23 = vector.load %arg3[%c0_1, %c0_2] : memref<256x32xf32, #tpu.memory_space<vmem>>, vector<256x32xf32>
    %24 = tpu.iota {dimensions = array<i32: 1>} : vector<4x256xi32>
    %c15_i32 = arith.constant 15 : i32
    %25 = vector.broadcast %c15_i32 : i32 to vector<4x256xi32>
    %26 = arith.andi %24, %25 : vector<4x256xi32>
    %c0_3 = arith.constant 0 : index
    %c0_4 = arith.constant 0 : index
    %c0_5 = arith.constant 0 : index
    %27 = vector.load %arg1[%c0_3, %c0_4, %c0_5] : memref<2x4x256xf32, #tpu.memory_space<vmem>>, vector<1x4x256xf32>
    %28 = vector.shape_cast %27 : vector<1x4x256xf32> to vector<4x256xf32>
    %c1_i32 = arith.constant 1 : i32
    %29 = tpu.dynamic_rotate %28 by %c1_i32 dim 1 : vector<4x256xf32>, i32 -> vector<4x256xf32>
    %c255_i32 = arith.constant 255 : i32
    %30 = tpu.dynamic_rotate %28 by %c255_i32 dim 1 : vector<4x256xf32>, i32 -> vector<4x256xf32>
    %c0_i32 = arith.constant 0 : i32
    %31 = vector.broadcast %c0_i32 : i32 to vector<4x256xi32>
    %32 = arith.cmpi eq, %26, %31 : vector<4x256xi32>
    %33 = arith.select %32, %28, %29 : vector<4x256xi1>, vector<4x256xf32>
    %c15_i32_6 = arith.constant 15 : i32
    %34 = vector.broadcast %c15_i32_6 : i32 to vector<4x256xi32>
    %35 = arith.cmpi eq, %26, %34 : vector<4x256xi32>
    %36 = arith.select %35, %28, %30 : vector<4x256xi1>, vector<4x256xf32>
    %37 = arith.maximumf %33, %36 : vector<4x256xf32>
    %38 = arith.maximumf %28, %37 : vector<4x256xf32>
    %c16_i32 = arith.constant 16 : i32
    %39 = tpu.dynamic_rotate %38 by %c16_i32 dim 1 : vector<4x256xf32>, i32 -> vector<4x256xf32>
    %c240_i32 = arith.constant 240 : i32
    %40 = tpu.dynamic_rotate %38 by %c240_i32 dim 1 : vector<4x256xf32>, i32 -> vector<4x256xf32>
    %c16_i32_7 = arith.constant 16 : i32
    %41 = vector.broadcast %c16_i32_7 : i32 to vector<4x256xi32>
    %42 = arith.cmpi slt, %24, %41 : vector<4x256xi32>
    %43 = arith.select %42, %38, %39 : vector<4x256xi1>, vector<4x256xf32>
    %c240_i32_8 = arith.constant 240 : i32
    %44 = vector.broadcast %c240_i32_8 : i32 to vector<4x256xi32>
    %45 = arith.cmpi sge, %24, %44 : vector<4x256xi32>
    %46 = arith.select %45, %38, %40 : vector<4x256xi1>, vector<4x256xf32>
    %47 = arith.maximumf %43, %46 : vector<4x256xf32>
    %48 = arith.maximumf %38, %47 : vector<4x256xf32>
    %49 = arith.mulf %48, %4 : vector<4x256xf32>
    %50 = arith.addf %49, %7 : vector<4x256xf32>
    %cst = arith.constant 0.000000e+00 : f32
    %51 = vector.broadcast %cst : f32 to vector<4x256xf32>
    %52 = arith.maximumf %50, %51 : vector<4x256xf32>
    %53 = vector.extract_strided_slice %52 {offsets = [0, 0], sizes = [1, 256], strides = [1, 1]} : vector<4x256xf32> to vector<1x256xf32>
    %54 = vector.broadcast %53 : vector<1x256xf32> to vector<4x256xf32>
    %55 = arith.mulf %13, %54 : vector<4x256xf32>
    %56 = arith.addf %10, %55 : vector<4x256xf32>
    %57 = vector.extract_strided_slice %52 {offsets = [1, 0], sizes = [1, 256], strides = [1, 1]} : vector<4x256xf32> to vector<1x256xf32>
    %58 = vector.broadcast %57 : vector<1x256xf32> to vector<4x256xf32>
    %59 = arith.mulf %16, %58 : vector<4x256xf32>
    %60 = arith.addf %56, %59 : vector<4x256xf32>
    %61 = vector.extract_strided_slice %52 {offsets = [2, 0], sizes = [1, 256], strides = [1, 1]} : vector<4x256xf32> to vector<1x256xf32>
    %62 = vector.broadcast %61 : vector<1x256xf32> to vector<4x256xf32>
    %63 = arith.mulf %19, %62 : vector<4x256xf32>
    %64 = arith.addf %60, %63 : vector<4x256xf32>
    %65 = vector.extract_strided_slice %52 {offsets = [3, 0], sizes = [1, 256], strides = [1, 1]} : vector<4x256xf32> to vector<1x256xf32>
    %66 = vector.broadcast %65 : vector<1x256xf32> to vector<4x256xf32>
    %67 = arith.mulf %22, %66 : vector<4x256xf32>
    %68 = arith.addf %64, %67 : vector<4x256xf32>
    %69 = arith.mulf %68, %4 : vector<4x256xf32>
    %70 = arith.addf %69, %7 : vector<4x256xf32>
    %cst_9 = arith.constant 0.000000e+00 : f32
    %71 = vector.broadcast %cst_9 : f32 to vector<4x256xf32>
    %72 = arith.maximumf %70, %71 : vector<4x256xf32>
    %73 = vector.extract_strided_slice %72 {offsets = [0, 0], sizes = [1, 256], strides = [1, 1]} : vector<4x256xf32> to vector<1x256xf32>
    %74 = vector.broadcast %73 : vector<1x256xf32> to vector<4x256xf32>
    %75 = arith.mulf %13, %74 : vector<4x256xf32>
    %76 = arith.addf %10, %75 : vector<4x256xf32>
    %77 = vector.extract_strided_slice %72 {offsets = [1, 0], sizes = [1, 256], strides = [1, 1]} : vector<4x256xf32> to vector<1x256xf32>
    %78 = vector.broadcast %77 : vector<1x256xf32> to vector<4x256xf32>
    %79 = arith.mulf %16, %78 : vector<4x256xf32>
    %80 = arith.addf %76, %79 : vector<4x256xf32>
    %81 = vector.extract_strided_slice %72 {offsets = [2, 0], sizes = [1, 256], strides = [1, 1]} : vector<4x256xf32> to vector<1x256xf32>
    %82 = vector.broadcast %81 : vector<1x256xf32> to vector<4x256xf32>
    %83 = arith.mulf %19, %82 : vector<4x256xf32>
    %84 = arith.addf %80, %83 : vector<4x256xf32>
    %85 = vector.extract_strided_slice %72 {offsets = [3, 0], sizes = [1, 256], strides = [1, 1]} : vector<4x256xf32> to vector<1x256xf32>
    %86 = vector.broadcast %85 : vector<1x256xf32> to vector<4x256xf32>
    %87 = arith.mulf %22, %86 : vector<4x256xf32>
    %88 = arith.addf %84, %87 : vector<4x256xf32>
    %89 = arith.mulf %88, %4 : vector<4x256xf32>
    %90 = arith.addf %89, %7 : vector<4x256xf32>
    %cst_10 = arith.constant 0.000000e+00 : f32
    %91 = vector.broadcast %cst_10 : f32 to vector<4x256xf32>
    %92 = arith.maximumf %90, %91 : vector<4x256xf32>
    %93 = vector.extract_strided_slice %92 {offsets = [0, 0], sizes = [1, 256], strides = [1, 1]} : vector<4x256xf32> to vector<1x256xf32>
    %94 = vector.broadcast %93 : vector<1x256xf32> to vector<4x256xf32>
    %95 = arith.mulf %13, %94 : vector<4x256xf32>
    %96 = arith.addf %10, %95 : vector<4x256xf32>
    %97 = vector.extract_strided_slice %92 {offsets = [1, 0], sizes = [1, 256], strides = [1, 1]} : vector<4x256xf32> to vector<1x256xf32>
    %98 = vector.broadcast %97 : vector<1x256xf32> to vector<4x256xf32>
    %99 = arith.mulf %16, %98 : vector<4x256xf32>
    %100 = arith.addf %96, %99 : vector<4x256xf32>
    %101 = vector.extract_strided_slice %92 {offsets = [2, 0], sizes = [1, 256], strides = [1, 1]} : vector<4x256xf32> to vector<1x256xf32>
    %102 = vector.broadcast %101 : vector<1x256xf32> to vector<4x256xf32>
    %103 = arith.mulf %19, %102 : vector<4x256xf32>
    %104 = arith.addf %100, %103 : vector<4x256xf32>
    %105 = vector.extract_strided_slice %92 {offsets = [3, 0], sizes = [1, 256], strides = [1, 1]} : vector<4x256xf32> to vector<1x256xf32>
    %106 = vector.broadcast %105 : vector<1x256xf32> to vector<4x256xf32>
    %107 = arith.mulf %22, %106 : vector<4x256xf32>
    %108 = arith.addf %104, %107 : vector<4x256xf32>
    %109 = arith.addf %108, %48 : vector<4x256xf32>
    %110 = arith.mulf %109, %4 : vector<4x256xf32>
    %111 = arith.addf %110, %7 : vector<4x256xf32>
    %cst_11 = arith.constant 0.000000e+00 : f32
    %112 = vector.broadcast %cst_11 : f32 to vector<4x256xf32>
    %113 = arith.maximumf %111, %112 : vector<4x256xf32>
    %114 = vector.extract_strided_slice %113 {offsets = [0, 0], sizes = [1, 256], strides = [1, 1]} : vector<4x256xf32> to vector<1x256xf32>
    %115 = vector.broadcast %114 : vector<1x256xf32> to vector<4x256xf32>
    %116 = arith.mulf %13, %115 : vector<4x256xf32>
    %117 = arith.addf %10, %116 : vector<4x256xf32>
    %118 = vector.extract_strided_slice %113 {offsets = [1, 0], sizes = [1, 256], strides = [1, 1]} : vector<4x256xf32> to vector<1x256xf32>
    %119 = vector.broadcast %118 : vector<1x256xf32> to vector<4x256xf32>
    %120 = arith.mulf %16, %119 : vector<4x256xf32>
    %121 = arith.addf %117, %120 : vector<4x256xf32>
    %122 = vector.extract_strided_slice %113 {offsets = [2, 0], sizes = [1, 256], strides = [1, 1]} : vector<4x256xf32> to vector<1x256xf32>
    %123 = vector.broadcast %122 : vector<1x256xf32> to vector<4x256xf32>
    %124 = arith.mulf %19, %123 : vector<4x256xf32>
    %125 = arith.addf %121, %124 : vector<4x256xf32>
    %126 = vector.extract_strided_slice %113 {offsets = [3, 0], sizes = [1, 256], strides = [1, 1]} : vector<4x256xf32> to vector<1x256xf32>
    %127 = vector.broadcast %126 : vector<1x256xf32> to vector<4x256xf32>
    %128 = arith.mulf %22, %127 : vector<4x256xf32>
    %129 = arith.addf %125, %128 : vector<4x256xf32>
    %130 = arith.mulf %129, %4 : vector<4x256xf32>
    %131 = arith.addf %130, %7 : vector<4x256xf32>
    %cst_12 = arith.constant 0.000000e+00 : f32
    %132 = vector.broadcast %cst_12 : f32 to vector<4x256xf32>
    %133 = arith.maximumf %131, %132 : vector<4x256xf32>
    %134 = vector.extract_strided_slice %133 {offsets = [0, 0], sizes = [1, 256], strides = [1, 1]} : vector<4x256xf32> to vector<1x256xf32>
    %135 = vector.broadcast %134 : vector<1x256xf32> to vector<4x256xf32>
    %136 = arith.mulf %13, %135 : vector<4x256xf32>
    %137 = arith.addf %10, %136 : vector<4x256xf32>
    %138 = vector.extract_strided_slice %133 {offsets = [1, 0], sizes = [1, 256], strides = [1, 1]} : vector<4x256xf32> to vector<1x256xf32>
    %139 = vector.broadcast %138 : vector<1x256xf32> to vector<4x256xf32>
    %140 = arith.mulf %16, %139 : vector<4x256xf32>
    %141 = arith.addf %137, %140 : vector<4x256xf32>
    %142 = vector.extract_strided_slice %133 {offsets = [2, 0], sizes = [1, 256], strides = [1, 1]} : vector<4x256xf32> to vector<1x256xf32>
    %143 = vector.broadcast %142 : vector<1x256xf32> to vector<4x256xf32>
    %144 = arith.mulf %19, %143 : vector<4x256xf32>
    %145 = arith.addf %141, %144 : vector<4x256xf32>
    %146 = vector.extract_strided_slice %133 {offsets = [3, 0], sizes = [1, 256], strides = [1, 1]} : vector<4x256xf32> to vector<1x256xf32>
    %147 = vector.broadcast %146 : vector<1x256xf32> to vector<4x256xf32>
    %148 = arith.mulf %22, %147 : vector<4x256xf32>
    %149 = arith.addf %145, %148 : vector<4x256xf32>
    %150 = arith.mulf %149, %4 : vector<4x256xf32>
    %151 = arith.addf %150, %7 : vector<4x256xf32>
    %cst_13 = arith.constant 0.000000e+00 : f32
    %152 = vector.broadcast %cst_13 : f32 to vector<4x256xf32>
    %153 = arith.maximumf %151, %152 : vector<4x256xf32>
    %154 = vector.extract_strided_slice %153 {offsets = [0, 0], sizes = [1, 256], strides = [1, 1]} : vector<4x256xf32> to vector<1x256xf32>
    %155 = vector.broadcast %154 : vector<1x256xf32> to vector<4x256xf32>
    %156 = arith.mulf %13, %155 : vector<4x256xf32>
    %157 = arith.addf %10, %156 : vector<4x256xf32>
    %158 = vector.extract_strided_slice %153 {offsets = [1, 0], sizes = [1, 256], strides = [1, 1]} : vector<4x256xf32> to vector<1x256xf32>
    %159 = vector.broadcast %158 : vector<1x256xf32> to vector<4x256xf32>
    %160 = arith.mulf %16, %159 : vector<4x256xf32>
    %161 = arith.addf %157, %160 : vector<4x256xf32>
    %162 = vector.extract_strided_slice %153 {offsets = [2, 0], sizes = [1, 256], strides = [1, 1]} : vector<4x256xf32> to vector<1x256xf32>
    %163 = vector.broadcast %162 : vector<1x256xf32> to vector<4x256xf32>
    %164 = arith.mulf %19, %163 : vector<4x256xf32>
    %165 = arith.addf %161, %164 : vector<4x256xf32>
    %166 = vector.extract_strided_slice %153 {offsets = [3, 0], sizes = [1, 256], strides = [1, 1]} : vector<4x256xf32> to vector<1x256xf32>
    %167 = vector.broadcast %166 : vector<1x256xf32> to vector<4x256xf32>
    %168 = arith.mulf %22, %167 : vector<4x256xf32>
    %169 = arith.addf %165, %168 : vector<4x256xf32>
    %170 = arith.addf %169, %109 : vector<4x256xf32>
    %cst_14 = arith.constant dense<0.000000e+00> : vector<4x32xf32>
    %171 = tpu.matmul %170, %23, %cst_14 {dimension_numbers = #tpu.dot_dimension_numbers<[1], [0], [0], [1], [0, 0, 1, 1], [], []>} : vector<4x256xf32>, vector<256x32xf32>, vector<4x32xf32> -> vector<4x32xf32>
    %c0_15 = arith.constant 0 : index
    %c0_16 = arith.constant 0 : index
    %c0_17 = arith.constant 0 : index
    %172 = vector.load %arg4[%c0_15, %c0_16, %c0_17] : memref<2x4x32xf32, #tpu.memory_space<vmem>>, vector<1x4x32xf32>
    %173 = vector.shape_cast %172 : vector<1x4x32xf32> to vector<4x32xf32>
    %174 = vector.shape_cast %171 : vector<4x32xf32> to vector<1x4x32xf32>
    tpu.vector_store %arg4[%c0_15, %c0_16, %c0_17], %174 {strides = array<i32>} : memref<2x4x32xf32, #tpu.memory_space<vmem>>, vector<1x4x32xf32>,
    %c1 = arith.constant 1 : index
    %c0_18 = arith.constant 0 : index
    %c0_19 = arith.constant 0 : index
    %175 = vector.load %arg1[%c1, %c0_18, %c0_19] : memref<2x4x256xf32, #tpu.memory_space<vmem>>, vector<1x4x256xf32>
    %176 = vector.shape_cast %175 : vector<1x4x256xf32> to vector<4x256xf32>
    %c1_i32_20 = arith.constant 1 : i32
    %177 = tpu.dynamic_rotate %176 by %c1_i32_20 dim 1 : vector<4x256xf32>, i32 -> vector<4x256xf32>
    %c255_i32_21 = arith.constant 255 : i32
    %178 = tpu.dynamic_rotate %176 by %c255_i32_21 dim 1 : vector<4x256xf32>, i32 -> vector<4x256xf32>
    %c0_i32_22 = arith.constant 0 : i32
    %179 = vector.broadcast %c0_i32_22 : i32 to vector<4x256xi32>
    %180 = arith.cmpi eq, %26, %179 : vector<4x256xi32>
    %181 = arith.select %180, %176, %177 : vector<4x256xi1>, vector<4x256xf32>
    %c15_i32_23 = arith.constant 15 : i32
    %182 = vector.broadcast %c15_i32_23 : i32 to vector<4x256xi32>
    %183 = arith.cmpi eq, %26, %182 : vector<4x256xi32>
    %184 = arith.select %183, %176, %178 : vector<4x256xi1>, vector<4x256xf32>
    %185 = arith.maximumf %181, %184 : vector<4x256xf32>
    %186 = arith.maximumf %176, %185 : vector<4x256xf32>
    %c16_i32_24 = arith.constant 16 : i32
    %187 = tpu.dynamic_rotate %186 by %c16_i32_24 dim 1 : vector<4x256xf32>, i32 -> vector<4x256xf32>
    %c240_i32_25 = arith.constant 240 : i32
    %188 = tpu.dynamic_rotate %186 by %c240_i32_25 dim 1 : vector<4x256xf32>, i32 -> vector<4x256xf32>
    %c16_i32_26 = arith.constant 16 : i32
    %189 = vector.broadcast %c16_i32_26 : i32 to vector<4x256xi32>
    %190 = arith.cmpi slt, %24, %189 : vector<4x256xi32>
    %191 = arith.select %190, %186, %187 : vector<4x256xi1>, vector<4x256xf32>
    %c240_i32_27 = arith.constant 240 : i32
    %192 = vector.broadcast %c240_i32_27 : i32 to vector<4x256xi32>
    %193 = arith.cmpi sge, %24, %192 : vector<4x256xi32>
    %194 = arith.select %193, %186, %188 : vector<4x256xi1>, vector<4x256xf32>
    %195 = arith.maximumf %191, %194 : vector<4x256xf32>
    %196 = arith.maximumf %186, %195 : vector<4x256xf32>
    %197 = arith.mulf %196, %4 : vector<4x256xf32>
    %198 = arith.addf %197, %7 : vector<4x256xf32>
    %cst_28 = arith.constant 0.000000e+00 : f32
    %199 = vector.broadcast %cst_28 : f32 to vector<4x256xf32>
    %200 = arith.maximumf %198, %199 : vector<4x256xf32>
    %201 = vector.extract_strided_slice %200 {offsets = [0, 0], sizes = [1, 256], strides = [1, 1]} : vector<4x256xf32> to vector<1x256xf32>
    %202 = vector.broadcast %201 : vector<1x256xf32> to vector<4x256xf32>
    %203 = arith.mulf %13, %202 : vector<4x256xf32>
    %204 = arith.addf %10, %203 : vector<4x256xf32>
    %205 = vector.extract_strided_slice %200 {offsets = [1, 0], sizes = [1, 256], strides = [1, 1]} : vector<4x256xf32> to vector<1x256xf32>
    %206 = vector.broadcast %205 : vector<1x256xf32> to vector<4x256xf32>
    %207 = arith.mulf %16, %206 : vector<4x256xf32>
    %208 = arith.addf %204, %207 : vector<4x256xf32>
    %209 = vector.extract_strided_slice %200 {offsets = [2, 0], sizes = [1, 256], strides = [1, 1]} : vector<4x256xf32> to vector<1x256xf32>
    %210 = vector.broadcast %209 : vector<1x256xf32> to vector<4x256xf32>
    %211 = arith.mulf %19, %210 : vector<4x256xf32>
    %212 = arith.addf %208, %211 : vector<4x256xf32>
    %213 = vector.extract_strided_slice %200 {offsets = [3, 0], sizes = [1, 256], strides = [1, 1]} : vector<4x256xf32> to vector<1x256xf32>
    %214 = vector.broadcast %213 : vector<1x256xf32> to vector<4x256xf32>
    %215 = arith.mulf %22, %214 : vector<4x256xf32>
    %216 = arith.addf %212, %215 : vector<4x256xf32>
    %217 = arith.mulf %216, %4 : vector<4x256xf32>
    %218 = arith.addf %217, %7 : vector<4x256xf32>
    %cst_29 = arith.constant 0.000000e+00 : f32
    %219 = vector.broadcast %cst_29 : f32 to vector<4x256xf32>
    %220 = arith.maximumf %218, %219 : vector<4x256xf32>
    %221 = vector.extract_strided_slice %220 {offsets = [0, 0], sizes = [1, 256], strides = [1, 1]} : vector<4x256xf32> to vector<1x256xf32>
    %222 = vector.broadcast %221 : vector<1x256xf32> to vector<4x256xf32>
    %223 = arith.mulf %13, %222 : vector<4x256xf32>
    %224 = arith.addf %10, %223 : vector<4x256xf32>
    %225 = vector.extract_strided_slice %220 {offsets = [1, 0], sizes = [1, 256], strides = [1, 1]} : vector<4x256xf32> to vector<1x256xf32>
    %226 = vector.broadcast %225 : vector<1x256xf32> to vector<4x256xf32>
    %227 = arith.mulf %16, %226 : vector<4x256xf32>
    %228 = arith.addf %224, %227 : vector<4x256xf32>
    %229 = vector.extract_strided_slice %220 {offsets = [2, 0], sizes = [1, 256], strides = [1, 1]} : vector<4x256xf32> to vector<1x256xf32>
    %230 = vector.broadcast %229 : vector<1x256xf32> to vector<4x256xf32>
    %231 = arith.mulf %19, %230 : vector<4x256xf32>
    %232 = arith.addf %228, %231 : vector<4x256xf32>
    %233 = vector.extract_strided_slice %220 {offsets = [3, 0], sizes = [1, 256], strides = [1, 1]} : vector<4x256xf32> to vector<1x256xf32>
    %234 = vector.broadcast %233 : vector<1x256xf32> to vector<4x256xf32>
    %235 = arith.mulf %22, %234 : vector<4x256xf32>
    %236 = arith.addf %232, %235 : vector<4x256xf32>
    %237 = arith.mulf %236, %4 : vector<4x256xf32>
    %238 = arith.addf %237, %7 : vector<4x256xf32>
    %cst_30 = arith.constant 0.000000e+00 : f32
    %239 = vector.broadcast %cst_30 : f32 to vector<4x256xf32>
    %240 = arith.maximumf %238, %239 : vector<4x256xf32>
    %241 = vector.extract_strided_slice %240 {offsets = [0, 0], sizes = [1, 256], strides = [1, 1]} : vector<4x256xf32> to vector<1x256xf32>
    %242 = vector.broadcast %241 : vector<1x256xf32> to vector<4x256xf32>
    %243 = arith.mulf %13, %242 : vector<4x256xf32>
    %244 = arith.addf %10, %243 : vector<4x256xf32>
    %245 = vector.extract_strided_slice %240 {offsets = [1, 0], sizes = [1, 256], strides = [1, 1]} : vector<4x256xf32> to vector<1x256xf32>
    %246 = vector.broadcast %245 : vector<1x256xf32> to vector<4x256xf32>
    %247 = arith.mulf %16, %246 : vector<4x256xf32>
    %248 = arith.addf %244, %247 : vector<4x256xf32>
    %249 = vector.extract_strided_slice %240 {offsets = [2, 0], sizes = [1, 256], strides = [1, 1]} : vector<4x256xf32> to vector<1x256xf32>
    %250 = vector.broadcast %249 : vector<1x256xf32> to vector<4x256xf32>
    %251 = arith.mulf %19, %250 : vector<4x256xf32>
    %252 = arith.addf %248, %251 : vector<4x256xf32>
    %253 = vector.extract_strided_slice %240 {offsets = [3, 0], sizes = [1, 256], strides = [1, 1]} : vector<4x256xf32> to vector<1x256xf32>
    %254 = vector.broadcast %253 : vector<1x256xf32> to vector<4x256xf32>
    %255 = arith.mulf %22, %254 : vector<4x256xf32>
    %256 = arith.addf %252, %255 : vector<4x256xf32>
    %257 = arith.addf %256, %196 : vector<4x256xf32>
    %258 = arith.mulf %257, %4 : vector<4x256xf32>
    %259 = arith.addf %258, %7 : vector<4x256xf32>
    %cst_31 = arith.constant 0.000000e+00 : f32
    %260 = vector.broadcast %cst_31 : f32 to vector<4x256xf32>
    %261 = arith.maximumf %259, %260 : vector<4x256xf32>
    %262 = vector.extract_strided_slice %261 {offsets = [0, 0], sizes = [1, 256], strides = [1, 1]} : vector<4x256xf32> to vector<1x256xf32>
    %263 = vector.broadcast %262 : vector<1x256xf32> to vector<4x256xf32>
    %264 = arith.mulf %13, %263 : vector<4x256xf32>
    %265 = arith.addf %10, %264 : vector<4x256xf32>
    %266 = vector.extract_strided_slice %261 {offsets = [1, 0], sizes = [1, 256], strides = [1, 1]} : vector<4x256xf32> to vector<1x256xf32>
    %267 = vector.broadcast %266 : vector<1x256xf32> to vector<4x256xf32>
    %268 = arith.mulf %16, %267 : vector<4x256xf32>
    %269 = arith.addf %265, %268 : vector<4x256xf32>
    %270 = vector.extract_strided_slice %261 {offsets = [2, 0], sizes = [1, 256], strides = [1, 1]} : vector<4x256xf32> to vector<1x256xf32>
    %271 = vector.broadcast %270 : vector<1x256xf32> to vector<4x256xf32>
    %272 = arith.mulf %19, %271 : vector<4x256xf32>
    %273 = arith.addf %269, %272 : vector<4x256xf32>
    %274 = vector.extract_strided_slice %261 {offsets = [3, 0], sizes = [1, 256], strides = [1, 1]} : vector<4x256xf32> to vector<1x256xf32>
    %275 = vector.broadcast %274 : vector<1x256xf32> to vector<4x256xf32>
    %276 = arith.mulf %22, %275 : vector<4x256xf32>
    %277 = arith.addf %273, %276 : vector<4x256xf32>
    %278 = arith.mulf %277, %4 : vector<4x256xf32>
    %279 = arith.addf %278, %7 : vector<4x256xf32>
    %cst_32 = arith.constant 0.000000e+00 : f32
    %280 = vector.broadcast %cst_32 : f32 to vector<4x256xf32>
    %281 = arith.maximumf %279, %280 : vector<4x256xf32>
    %282 = vector.extract_strided_slice %281 {offsets = [0, 0], sizes = [1, 256], strides = [1, 1]} : vector<4x256xf32> to vector<1x256xf32>
    %283 = vector.broadcast %282 : vector<1x256xf32> to vector<4x256xf32>
    %284 = arith.mulf %13, %283 : vector<4x256xf32>
    %285 = arith.addf %10, %284 : vector<4x256xf32>
    %286 = vector.extract_strided_slice %281 {offsets = [1, 0], sizes = [1, 256], strides = [1, 1]} : vector<4x256xf32> to vector<1x256xf32>
    %287 = vector.broadcast %286 : vector<1x256xf32> to vector<4x256xf32>
    %288 = arith.mulf %16, %287 : vector<4x256xf32>
    %289 = arith.addf %285, %288 : vector<4x256xf32>
    %290 = vector.extract_strided_slice %281 {offsets = [2, 0], sizes = [1, 256], strides = [1, 1]} : vector<4x256xf32> to vector<1x256xf32>
    %291 = vector.broadcast %290 : vector<1x256xf32> to vector<4x256xf32>
    %292 = arith.mulf %19, %291 : vector<4x256xf32>
    %293 = arith.addf %289, %292 : vector<4x256xf32>
    %294 = vector.extract_strided_slice %281 {offsets = [3, 0], sizes = [1, 256], strides = [1, 1]} : vector<4x256xf32> to vector<1x256xf32>
    %295 = vector.broadcast %294 : vector<1x256xf32> to vector<4x256xf32>
    %296 = arith.mulf %22, %295 : vector<4x256xf32>
    %297 = arith.addf %293, %296 : vector<4x256xf32>
    %298 = arith.mulf %297, %4 : vector<4x256xf32>
    %299 = arith.addf %298, %7 : vector<4x256xf32>
    %cst_33 = arith.constant 0.000000e+00 : f32
    %300 = vector.broadcast %cst_33 : f32 to vector<4x256xf32>
    %301 = arith.maximumf %299, %300 : vector<4x256xf32>
    %302 = vector.extract_strided_slice %301 {offsets = [0, 0], sizes = [1, 256], strides = [1, 1]} : vector<4x256xf32> to vector<1x256xf32>
    %303 = vector.broadcast %302 : vector<1x256xf32> to vector<4x256xf32>
    %304 = arith.mulf %13, %303 : vector<4x256xf32>
    %305 = arith.addf %10, %304 : vector<4x256xf32>
    %306 = vector.extract_strided_slice %301 {offsets = [1, 0], sizes = [1, 256], strides = [1, 1]} : vector<4x256xf32> to vector<1x256xf32>
    %307 = vector.broadcast %306 : vector<1x256xf32> to vector<4x256xf32>
    %308 = arith.mulf %16, %307 : vector<4x256xf32>
    %309 = arith.addf %305, %308 : vector<4x256xf32>
    %310 = vector.extract_strided_slice %301 {offsets = [2, 0], sizes = [1, 256], strides = [1, 1]} : vector<4x256xf32> to vector<1x256xf32>
    %311 = vector.broadcast %310 : vector<1x256xf32> to vector<4x256xf32>
    %312 = arith.mulf %19, %311 : vector<4x256xf32>
    %313 = arith.addf %309, %312 : vector<4x256xf32>
    %314 = vector.extract_strided_slice %301 {offsets = [3, 0], sizes = [1, 256], strides = [1, 1]} : vector<4x256xf32> to vector<1x256xf32>
    %315 = vector.broadcast %314 : vector<1x256xf32> to vector<4x256xf32>
    %316 = arith.mulf %22, %315 : vector<4x256xf32>
    %317 = arith.addf %313, %316 : vector<4x256xf32>
    %318 = arith.addf %317, %257 : vector<4x256xf32>
    %cst_34 = arith.constant dense<0.000000e+00> : vector<4x32xf32>
    %319 = tpu.matmul %318, %23, %cst_34 {dimension_numbers = #tpu.dot_dimension_numbers<[1], [0], [0], [1], [0, 0, 1, 1], [], []>} : vector<4x256xf32>, vector<256x32xf32>, vector<4x32xf32> -> vector<4x32xf32>
    %c1_35 = arith.constant 1 : index
    %c0_36 = arith.constant 0 : index
    %c0_37 = arith.constant 0 : index
    %320 = vector.load %arg4[%c1_35, %c0_36, %c0_37] : memref<2x4x32xf32, #tpu.memory_space<vmem>>, vector<1x4x32xf32>
    %321 = vector.shape_cast %320 : vector<1x4x32xf32> to vector<4x32xf32>
    %322 = vector.shape_cast %319 : vector<4x32xf32> to vector<1x4x32xf32>
    tpu.vector_store %arg4[%c1_35, %c0_36, %c0_37], %322 {strides = array<i32>} : memref<2x4x32xf32, #tpu.memory_space<vmem>>, vector<1x4x32xf32>,
    return
  }
  func.func @transform_0(%arg0: i32) -> (i32, i32, i32) {
    %c0_i32 = arith.constant 0 : i32
    %c0_i32_0 = arith.constant 0 : i32
    %c0_i32_1 = arith.constant 0 : i32
    return %arg0, %c0_i32, %c0_i32_0 : i32, i32, i32
  }
  func.func @transform_1(%arg0: i32) -> (i32, i32) {
    %c0_i32 = arith.constant 0 : i32
    %c0_i32_0 = arith.constant 0 : i32
    %c0_i32_1 = arith.constant 0 : i32
    return %c0_i32, %c0_i32_0 : i32, i32
  }
  func.func @transform_2(%arg0: i32) -> (i32, i32) {
    %c0_i32 = arith.constant 0 : i32
    %c0_i32_0 = arith.constant 0 : i32
    %c0_i32_1 = arith.constant 0 : i32
    return %c0_i32, %c0_i32_0 : i32, i32
  }
  func.func @transform_3(%arg0: i32) -> (i32, i32, i32) {
    %c0_i32 = arith.constant 0 : i32
    %c0_i32_0 = arith.constant 0 : i32
    %c0_i32_1 = arith.constant 0 : i32
    return %arg0, %c0_i32, %c0_i32_0 : i32, i32, i32
  }
}

</mosaic_0001>

<bundles_post_ra>
// kernel: _forward.1
= control target key start
LH: loop header
LB: loop body
LE: loop exit
PB: predicated region body
PF: predicated region fallthrough
CT: control target
= control target key end

     0   :  { %v1259_v1 = vmov 4   ;;  %s1260_s14 = smov 127   ;;  %s1261_s15 = smov 1   ;;  %v1262_v6 = vmov 0   ;;  %v1263_v7 = vmov 5   ;;  %v76_v8 = vlaneseq  ;;  %s1858_s0 = inlined_call_operand.vmem [shape: f32[2,4,256], index: 0, kind: input, shape index: {}]   ;;  %s1859_s1 = inlined_call_operand.vmem [shape: f32[4,7], index: 1, kind: input, shape index: {}]   ;;  %s1860_s2 = inlined_call_operand.vmem [shape: f32[256,32], index: 2, kind: input, shape index: {}]   ;;  %s1861_s3 = inlined_call_operand.vmem [shape: f32[2,4,32], index: 3, kind: output, shape index: {}]  }
   0x1   :  { %v81_v0 = vld [vmem:[%s1858_s0] sm:$0xff]  ;;  %1249 = vset.pattern.permute.xlu0 %v1259_v1  ;;  %v1297_v3 = vld [vmem:[%s1858_s0 + $0x8] sm:$0xff]  ;;  %1251 = vset.pattern.permute.xlu1 %v1262_v6  ;;  %s1264_s0 = smov 112   ;;  %v1266_v51 = vmov 1   ;;  %v1267_v52 = vmov 6   ;;  %v1268_v53 = vmov 3  }
   0x2   :  { %92 = vrot.lane.b32.xlu1 %v81_v0, %s1260_s14  ;;  %85 = vrot.lane.b32.xlu0 %v81_v0, %s1261_s15  ;;  %v83_v2 = vcombine.high %v81_v0, %v81_v0  ;;  %v605_v4 = vcombine.high %v1297_v3, %v1297_v3  ;;  %v1306_v5 = vld [vmem:[%s1859_s1] sm:$0xf]  ;;  %v1310_v9 = vand.u32 127, %v76_v8  ;;  %s1265_s1 = smov 16   ;;  %v1269_v54 = vmov 2   ;;  %v61_v56 = vld [vmem:[%s1860_s2 + $0x88] sm:$0xff] }
   0x3   :  { %v60_v55 = vld [vmem:[%s1860_s2 + $0x80] sm:$0xff]  ;;  %v45_v59 = vld [vmem:[%s1860_s2 + $0x8] sm:$0xff]  ;;  %v62_v60 = vld [vmem:[%s1860_s2 + $0x90] sm:$0xff]  ;;  %vm600_vm9 = vcmask 257024  }
   0x4   :  { %v1313_v10 = vadd.s32 128, %v1310_v9  ;;  %v79_v11 = vand.u32 15, %v1310_v9  ;;  %vm96_vm0 = vcmp.lt.s32.totalorder %v1310_v9, 127  ;;  %vm89_vm1 = vcmp.lt.s32.totalorder %v1310_v9, 1  ;;  %v44_v57 = vld [vmem:[%s1860_s2] sm:$0xff]  ;;  %v63_v61 = vld [vmem:[%s1860_s2 + $0x98] sm:$0xff] }
   0x5   :  { %v1173_v58 = vpack.c.bf16 %v61_v56, %v60_v55  ;;  %v1175_v62 = vpack.c.bf16 %v45_v59, %v44_v57  ;;  %v1177_v63 = vpack.c.bf16 %v63_v61, %v62_v60  ;;  %v47_v1 = vld [vmem:[%s1860_s2 + $0x18] sm:$0xff]  ;;  %v48_v6 = vld [vmem:[%s1860_s2 + $0x20] sm:$0xff]  ;;  %v50_v15 = vld [vmem:[%s1860_s2 + $0x30] sm:$0xff]  ;;  %vm128_vm6 = vcmp.lt.s32.totalorder %v1310_v9, 112 }
   0x6   :  { %94 = vrot.lane.b32.xlu1 %v83_v2, %s1260_s14  ;;  %87 = vrot.lane.b32.xlu0 %v83_v2, %s1261_s15  ;;  %v80_v12 = vand.u32 15, %v1313_v10  ;;  %vm1319_vm2 = vcmp.eq.s32.totalorder %v79_v11, 15  ;;  %vm1327_vm4 = vcmp.eq.s32.totalorder %v79_v11, 0  ;;  %v66_v11 = vld [vmem:[%s1860_s2 + $0xb0] sm:$0xff]  ;;  %v51_v16 = vld [vmem:[%s1860_s2 + $0x38] sm:$0xff]  ;;  %vm121_vm7 = vcmp.lt.s32.totalorder %v1310_v9, 16 }
   0x7   :  { %1174 = vmatprep.subr.bf16.mxu0 %v1173_v58  ;;  %1206 = vmatprep.subr.bf16.mxu1 %v1173_v58  ;;  %v68_v17 = vld [vmem:[%s1860_s2 + $0xc0] sm:$0xff]  ;;  %v69_v18 = vld [vmem:[%s1860_s2 + $0xc8] sm:$0xff]  ;;  %vm135_vm8 = vcmp.ge.s32.totalorder %v1313_v10, 240  ;;  %v1270_v60 = vmov 839922192  }
   0x8   :  { %vm1323_vm3 = vcmp.eq.s32.totalorder %v80_v12, 15  ;;  %vm1331_vm5 = vcmp.eq.s32.totalorder %v80_v12, 0  ;;  %1176 = vmatpush3.bf16.msra.mxu0 %v1175_v62  ;;  %1208 = vmatpush3.bf16.msra.mxu1 %v1175_v62  ;;  %v67_v12 = vld [vmem:[%s1860_s2 + $0xb8] sm:$0xff]  ;;  %v146_v61 = vunpack.c.l.s4 %v1270_v60 }
   0x9   :  { %1178 = vmatprep.subr.bf16.mxu0 %v1177_v63  ;;  %1210 = vmatprep.subr.bf16.mxu1 %v1177_v63 }
   0xa   :  { %609 = vrot.lane.b32.xlu1 %v605_v4, %s1261_s15  ;;  %607 = vrot.lane.b32.xlu0 %v1297_v3, %s1261_s15 }
   0xe   :  { %615 = vrot.lane.b32.xlu1 %v605_v4, %s1260_s14  ;;  %613 = vrot.lane.b32.xlu0 %v1297_v3, %s1260_s14 }
  0x12   :  { %17 = vperm.xlu0 %1249, %v1306_v5  }
  0x16   :  { %1250 = vset.pattern.permute.xlu0 %v1263_v7  ;;  %v49_v7 = vld [vmem:[%s1860_s2 + $0x28] sm:$0xff] }
  0x74   :  { %v93_v13 = vpop.permute.xlu1 %92  ;;  %v86_v14 = vpop.permute.xlu0 %85 }
  0x78   :  { %v95_v19 = vpop.permute.xlu1 %94  ;;  %v88_v20 = vpop.permute.xlu0 %87 }
  0x79   :  { %v97_v21 = vsel %vm96_vm0, %v93_v13, %v95_v19  ;;  %v98_v22 = vsel %vm96_vm0, %v95_v19, %v93_v13  ;;  %v90_v23 = vsel %vm89_vm1, %v86_v14, %v88_v20  ;;  %v91_v24 = vsel %vm89_vm1, %v88_v20, %v86_v14 }
  0x7a   :  { %v105_v25 = vsel %vm1319_vm2, %v81_v0, %v97_v21  ;;  %v106_v26 = vsel %vm1323_vm3, %v83_v2, %v98_v22  ;;  %v101_v27 = vsel %vm1327_vm4, %v81_v0, %v91_v24  ;;  %v102_v28 = vsel %vm1331_vm5, %v83_v2, %v90_v23  ;;  %v64_v2 = vld [vmem:[%s1860_s2 + $0xa0] sm:$0xff]  ;;  %v53_v22 = vld [vmem:[%s1860_s2 + $0x48] sm:$0xff]  ;;  %v70_v23 = vld [vmem:[%s1860_s2 + $0xd0] sm:$0xff] }
  0x7b   :  { %v107_v29 = vmax.f32 %v101_v27, %v105_v25  ;;  %v108_v30 = vmax.f32 %v102_v28, %v106_v26  ;;  %v1183_v13 = vpack.c.bf16 %v49_v7, %v48_v6  ;;  %v1185_v14 = vpack.c.bf16 %v67_v12, %v66_v11  ;;  %v52_v21 = vld [vmem:[%s1860_s2 + $0x40] sm:$0xff]  ;;  %v71_v24 = vld [vmem:[%s1860_s2 + $0xd8] sm:$0xff]  ;;  %v54_v27 = vld [vmem:[%s1860_s2 + $0x50] sm:$0xff] }
  0x7c   :  { %v610_v31 = vpop.permute.xlu1 %609  ;;  %v608_v32 = vpop.permute.xlu0 %607  ;;  %v1187_v19 = vpack.c.bf16 %v51_v16, %v50_v15  ;;  %v1189_v20 = vpack.c.bf16 %v69_v18, %v68_v17  ;;  %v1191_v25 = vpack.c.bf16 %v53_v22, %v52_v21  ;;  %v1193_v26 = vpack.c.bf16 %v71_v24, %v70_v23  ;;  %v55_v28 = vld [vmem:[%s1860_s2 + $0x58] sm:$0xff] }
  0x7d   :  { %v111_v33 = vcombine.low %v107_v29, %v108_v30  ;;  %v611_v35 = vsel %vm89_vm1, %v608_v32, %v610_v31  ;;  %v612_v36 = vsel %vm89_vm1, %v610_v31, %v608_v32  ;;  %v72_v29 = vld [vmem:[%s1860_s2 + $0xe0] sm:$0xff]  ;;  %v73_v30 = vld [vmem:[%s1860_s2 + $0xe8] sm:$0xff]  ;;  %v1195_v31 = vpack.c.bf16 %v55_v28, %v54_v27 }
  0x7e   :  { %v619_v41 = vsel %vm1327_vm4, %v1297_v3, %v612_v36  ;;  %v620_v42 = vsel %vm1331_vm5, %v605_v4, %v611_v35  ;;  %v1197_v32 = vpack.c.bf16 %v73_v30, %v72_v29  ;;  %v57_v35 = vld [vmem:[%s1860_s2 + $0x68] sm:$0xff]  ;;  %v74_v36 = vld [vmem:[%s1860_s2 + $0xf0] sm:$0xff]  ;;  %v149_v11 = vshrl.u32 %v76_v8, 7 }
  0x7f   :  { %v1351_v34 = vmax.f32 %v81_v0, %v111_v33  ;;  %v46_v0 = vld [vmem:[%s1860_s2 + $0x10] sm:$0xff]  ;;  %v56_v33 = vld [vmem:[%s1860_s2 + $0x60] sm:$0xff]  ;;  %v147_v12 = vunpack.c.0.s8 %v146_v61 }
  0x80   :  { %v616_v37 = vpop.permute.xlu1 %615  ;;  %v614_v38 = vpop.permute.xlu0 %613  ;;  %v215_v22 = vsub.s32 6, %v149_v11  ;;  %v237_v23 = vsub.s32 7, %v149_v11  ;;  %v1544_v27 = vsub.s32 1, %v149_v11  ;;  %v1546_v28 = vsub.s32 2, %v149_v11 }
  0x81   :  { %v617_v39 = vsel %vm96_vm0, %v614_v38, %v616_v37  ;;  %v618_v40 = vsel %vm96_vm0, %v616_v37, %v614_v38  ;;  %124 = vrot.lane.b32.xlu0 %v1351_v34, %s1264_s0  ;;  %117 = vrot.lane.b32.xlu1 %v1351_v34, %s1265_s1  ;;  %v1375_v47 = vcombine.high %v1351_v34, %v1351_v34  ;;  %v75_v37 = vld [vmem:[%s1860_s2 + $0xf8] sm:$0xff] }
  0x82   :  { %v621_v43 = vsel %vm1319_vm2, %v1297_v3, %v617_v39  ;;  %v622_v44 = vsel %vm1323_vm3, %v605_v4, %v618_v40  ;;  %v1179_v4 = vpack.c.bf16 %v47_v1, %v46_v0  ;;  %v1199_v38 = vpack.c.bf16 %v57_v35, %v56_v33  ;;  %v58_v40 = vld [vmem:[%s1860_s2 + $0x70] sm:$0xff] }
  0x83   :  { %v623_v45 = vmax.f32 %v619_v41, %v621_v43  ;;  %v624_v46 = vmax.f32 %v620_v42, %v622_v44  ;;  %v1201_v39 = vpack.c.bf16 %v75_v37, %v74_v36  ;;  %v59_v41 = vld [vmem:[%s1860_s2 + $0x78] sm:$0xff]  ;;  %v150_v15 = vsub.s32 %v147_v12, %v149_v11 }
  0x84   :  { %1180 = vmatpush3.bf16.msra.mxu0 %v1179_v4  ;;  %1212 = vmatpush3.bf16.msra.mxu1 %v1179_v4  ;;  %v1203_v42 = vpack.c.bf16 %v59_v41, %v58_v40  ;;  %v1548_v33 = vsub.s32 3, %v149_v11 }
  0x85   :  { %v627_v48 = vcombine.low %v623_v45, %v624_v46  ;;  %119 = vrot.lane.b32.xlu1 %v1375_v47, %s1265_s1 }
  0x87   :  { %v1379_v49 = vmax.f32 %v1297_v3, %v627_v48  ;;  %v65_v3 = vld [vmem:[%s1860_s2 + $0xa8] sm:$0xff] }
  0x89   :  { %126 = vrot.lane.b32.xlu1 %v1375_v47, %s1264_s0  ;;  %633 = vrot.lane.b32.xlu0 %v1379_v49, %s1265_s1  ;;  %v1385_v50 = vcombine.high %v1379_v49, %v1379_v49 }
  0x8d   :  { %639 = vrot.lane.b32.xlu0 %v1379_v49, %s1264_s0  ;;  %635 = vrot.lane.b32.xlu1 %v1385_v50, %s1265_s1 }
  0x91   :  { %21 = vperm.xlu0 %1250, %v1306_v5   ;;  %641 = vrot.lane.b32.xlu1 %v1385_v50, %s1264_s0  ;;  %v1492_v43 = vpop.permute.xlu0 %17 }
  0x92   :  { %v151_v9 = vrot.slane %v1492_v43, %v150_v15 }
  0x95   :  { %29 = vperm.xlu1 %1251, %v1306_v5   ;;  %1253 = vset.pattern.permute.xlu0 %v1266_v51 }
  0x96   :  { %33 = vperm.xlu0 %1253, %v1306_v5  }
  0x99   :  { %1252 = vset.pattern.permute.xlu1 %v1267_v52 }
  0x9a   :  { %25 = vperm.xlu1 %1252, %v1306_v5   ;;  %1256 = vset.pattern.permute.xlu0 %v1268_v53 }
  0x9e   :  { %1254 = vset.pattern.permute.xlu1 %v1269_v54 }
  0x9f   :  { %37 = vperm.xlu1 %1254, %v1306_v5  }
  0xa3   :  { %1255 = vset.pattern.permute.xlu1 %v1268_v53 }
  0xa4   :  { %41 = vperm.xlu1 %1255, %v1306_v5   ;;  %v1181_v5 = vpack.c.bf16 %v65_v3, %v64_v2 }
  0xa6   :  { %1182 = vmatprep.subr.bf16.mxu0 %v1181_v5  ;;  %1214 = vmatprep.subr.bf16.mxu1 %v1181_v5 }
  0xa7   :  { %1184 = vmatpush3.bf16.msra.mxu0 %v1183_v13  ;;  %1216 = vmatpush3.bf16.msra.mxu1 %v1183_v13 }
  0xa8   :  { %1186 = vmatprep.subr.bf16.mxu0 %v1185_v14  ;;  %1218 = vmatprep.subr.bf16.mxu1 %v1185_v14 }
  0xab   :  { %1188 = vmatpush3.bf16.msra.mxu0 %v1187_v19  ;;  %1220 = vmatpush3.bf16.msra.mxu1 %v1187_v19  ;;  %v171_v19 = vsub.s32 4, %v149_v11 }
  0xac   :  { %1190 = vmatprep.subr.bf16.mxu0 %v1189_v20  ;;  %1222 = vmatprep.subr.bf16.mxu1 %v1189_v20  ;;  %v193_v20 = vsub.s32 5, %v149_v11 }
  0xaf   :  { %1192 = vmatpush3.bf16.msra.mxu0 %v1191_v25  ;;  %1224 = vmatpush3.bf16.msra.mxu1 %v1191_v25 }
  0xb0   :  { %1194 = vmatprep.subr.bf16.mxu0 %v1193_v26  ;;  %1226 = vmatprep.subr.bf16.mxu1 %v1193_v26  ;;  %v1542_v26 = vsub.s32 0, %v149_v11 }
  0xb3   :  { %1196 = vmatpush3.bf16.msra.mxu0 %v1195_v31  ;;  %1228 = vmatpush3.bf16.msra.mxu1 %v1195_v31 }
  0xb4   :  { %1198 = vmatprep.subr.bf16.mxu0 %v1197_v32  ;;  %1230 = vmatprep.subr.bf16.mxu1 %v1197_v32 }
  0xb7   :  { %1200 = vmatpush3.bf16.msra.mxu0 %v1199_v38  ;;  %1232 = vmatpush3.bf16.msra.mxu1 %v1199_v38 }
  0xb8   :  { %1202 = vmatprep.subr.bf16.mxu0 %v1201_v39  ;;  %1234 = vmatprep.subr.bf16.mxu1 %v1201_v39 }
  0xbb   :  { %1204 = vmatpush3.bf16.msra.mxu0 %v1203_v42  ;;  %1236 = vmatpush3.bf16.msra.mxu1 %v1203_v42 }
  0xf3   :  { %v118_v44 = vpop.permute.xlu1 %117  ;;  %v125_v46 = vpop.permute.xlu0 %124 }
  0xf7   :  { %v120_v45 = vpop.permute.xlu1 %119 }
  0xf8   :  { %v123_v54 = vsel %vm121_vm7, %v120_v45, %v118_v44  ;;  %v122_v58 = vsel %vm121_vm7, %v118_v44, %v120_v45 }
  0xf9   :  { %v132_v59 = vsel %vm121_vm7, %v1351_v34, %v123_v54 }
  0xfb   :  { %v127_v48 = vpop.permute.xlu1 %126  ;;  %v634_v51 = vpop.permute.xlu0 %633 }
  0xfc   :  { %v130_v52 = vsel %vm128_vm6, %v127_v48, %v125_v46  ;;  %v129_v55 = vsel %vm128_vm6, %v125_v46, %v127_v48 }
  0xfd   :  { %v137_v57 = vsel %vm135_vm8, %v1375_v47, %v130_v52  ;;  %v138_v0 = vmax.f32 %v132_v59, %v129_v55 }
  0xfe   :  { %v139_v3 = vmax.f32 %v122_v58, %v137_v57 }
  0xff   :  { %v636_v53 = vpop.permute.xlu1 %635  ;;  %v640_v62 = vpop.permute.xlu0 %639 }
 0x100   :  { %v638_v56 = vsel %vm121_vm7, %v636_v53, %v634_v51  ;;  %v637_v4 = vsel %vm121_vm7, %v634_v51, %v636_v53  ;;  %v142_v13 = vcombine.low %v138_v0, %v139_v3 }
 0x101   :  { %v645_v47 = vsel %vm121_vm7, %v1379_v49, %v638_v56 }
 0x102   :  { %v1527_v16 = vmax.f32 %v1351_v34, %v142_v13 }
 0x103   :  { %v642_v63 = vpop.permute.xlu1 %641 }
 0x104   :  { %v643_v1 = vsel %vm128_vm6, %v640_v62, %v642_v63  ;;  %v644_v2 = vsel %vm128_vm6, %v642_v63, %v640_v62  ;;  %v153_v10 = vmul.f32 %v151_v9, %v1527_v16 }
 0x105   :  { %v648_v5 = vsel %vm135_vm8, %v1385_v50, %v644_v2  ;;  %v649_v6 = vmax.f32 %v645_v47, %v643_v1 }
 0x106   :  { %v650_v7 = vmax.f32 %v637_v4, %v648_v5 }
 0x108   :  { %v653_v14 = vcombine.low %v649_v6, %v650_v7 }
 0x10a   :  { %v1530_v17 = vmax.f32 %v1379_v49, %v653_v14 }
 0x10c   :  { %v656_v50 = vmul.f32 %v1530_v17, %v151_v9 }
 0x110   :  { %v1533_v18 = vpop.permute.xlu0 %21 }
 0x111   :  { %v160_v8 = vrot.slane %v1533_v18, %v150_v15 }
 0x113   :  { %v162_v21 = vadd.f32 %v160_v8, %v153_v10  ;;  %v657_v34 = vadd.f32 %v656_v50, %v160_v8 }
 0x114   :  { %v1538_v24 = vpop.permute.xlu1 %29 }
 0x115   :  { %v163_v49 = vmax.f32 %v162_v21, 0.0  ;;  %v1540_v25 = vmax.f32 %v657_v34, 0.0  ;;  %v1555_v39 = vpop.permute.xlu0 %33 }
 0x117   :  { %v172_v29 = vrot.slane %v163_v49, %v171_v19  ;;  %v194_v30 = vrot.slane %v163_v49, %v193_v20  ;;  %v216_v31 = vrot.slane %v163_v49, %v215_v22  ;;  %v238_v32 = vrot.slane %v163_v49, %v237_v23 }
 0x118   :  { %v667_v35 = vrot.slane %v1540_v25, %v171_v19  ;;  %v689_v36 = vrot.slane %v1540_v25, %v193_v20  ;;  %v711_v37 = vrot.slane %v1540_v25, %v215_v22  ;;  %v733_v42 = vrot.slane %v1540_v25, %v237_v23 }
 0x119   :  { %v1553_v38 = vpop.permute.xlu1 %25  ;;  %v182_v40 = vrot.slane %v172_v29, %v1542_v26  ;;  %v204_v41 = vrot.slane %v194_v30, %v1544_v27  ;;  %v226_v44 = vrot.slane %v216_v31, %v1546_v28  ;;  %v248_v45 = vrot.slane %v238_v32, %v1548_v33 }
 0x11a   :  { %v677_v46 = vrot.slane %v667_v35, %v1542_v26  ;;  %v699_v48 = vrot.slane %v689_v36, %v1544_v27  ;;  %v721_v52 = vrot.slane %v711_v37, %v1546_v28  ;;  %v168_v53 = vrot.slane %v163_v49, %v1542_v26 }
 0x11b   :  { %v184_v51 = vmul.f32 %v182_v40, %v1538_v24  ;;  %v190_v54 = vrot.slane %v163_v49, %v1544_v27  ;;  %v206_v55 = vmul.f32 %v204_v41, %v1555_v39  ;;  %v212_v58 = vrot.slane %v163_v49, %v1546_v28 }
 0x11c   :  { %v679_v56 = vmul.f32 %v677_v46, %v1538_v24  ;;  %v701_v57 = vmul.f32 %v699_v48, %v1555_v39  ;;  %v178_v60 = vrot.slane %v168_v53, %v1542_v26  ;;  %v663_v62 = vrot.slane %v1540_v25, %v1542_v26 }
 0x11d   :  { %v186_v59 = vadd.f32 %v184_v51, %v1553_v38  ;;  %v200_v61 = vrot.slane %v190_v54, %v1544_v27  ;;  %v222_v1 = vrot.slane %v212_v58, %v1546_v28  ;;  %v234_v2 = vrot.slane %v163_v49, %v1548_v33 }
 0x11e   :  { %v1577_v63 = vpop.permute.xlu1 %37  ;;  %v681_v0 = vadd.f32 %v679_v56, %v1553_v38  ;;  %v685_v47 = vrot.slane %v1540_v25, %v1544_v27  ;;  %v183_v6 = vmul.f32 %v178_v60, %v1538_v24  ;;  %v743_v11 = vrot.slane %v733_v42, %v1548_v33 }
 0x11f   :  { %v208_v3 = vadd.f32 %v206_v55, %v186_v59  ;;  %v228_v4 = vmul.f32 %v226_v44, %v1577_v63  ;;  %v723_v5 = vmul.f32 %v721_v52, %v1577_v63  ;;  %v205_v12 = vmul.f32 %v200_v61, %v1555_v39 }
 0x120   :  { %v703_v7 = vadd.f32 %v701_v57, %v681_v0  ;;  %v673_v13 = vrot.slane %v663_v62, %v1542_v26  ;;  %v185_v14 = vadd.f32 %v183_v6, %v1553_v38  ;;  %v227_v15 = vmul.f32 %v222_v1, %v1577_v63 }
 0x121   :  { %v695_v9 = vrot.slane %v685_v47, %v1544_v27  ;;  %v707_v10 = vrot.slane %v1540_v25, %v1546_v28  ;;  %v230_v50 = vadd.f32 %v228_v4, %v208_v3  ;;  %v244_v8 = vrot.slane %v234_v2, %v1548_v33 }
 0x122   :  { %v678_v19 = vmul.f32 %v673_v13, %v1538_v24  ;;  %v729_v20 = vrot.slane %v1540_v25, %v1548_v33  ;;  %v725_v22 = vadd.f32 %v723_v5, %v703_v7  ;;  %v207_v23 = vadd.f32 %v205_v12, %v185_v14 }
 0x123   :  { %v1599_v21 = vpop.permute.xlu1 %41  ;;  %v700_v34 = vmul.f32 %v695_v9, %v1555_v39  ;;  %v717_v49 = vrot.slane %v707_v10, %v1546_v28 }
 0x124   :  { %v250_v29 = vmul.f32 %v248_v45, %v1599_v21  ;;  %v745_v30 = vmul.f32 %v743_v11, %v1599_v21  ;;  %v249_v31 = vmul.f32 %v244_v8, %v1599_v21  ;;  %v680_v32 = vadd.f32 %v678_v19, %v1553_v38 }
 0x125   :  { %v229_v35 = vadd.f32 %v227_v15, %v207_v23  ;;  %v722_v36 = vmul.f32 %v717_v49, %v1577_v63  ;;  %v739_v25 = vrot.slane %v729_v20, %v1548_v33 }
 0x126   :  { %v252_v37 = vadd.f32 %v250_v29, %v230_v50  ;;  %v747_v40 = vadd.f32 %v745_v30, %v725_v22  ;;  %v702_v41 = vadd.f32 %v700_v34, %v680_v32 }
 0x127   :  { %v251_v42 = vadd.f32 %v249_v31, %v229_v35  ;;  %v744_v44 = vmul.f32 %v739_v25, %v1599_v21 }
 0x128   :  { %v254_v46 = vmul.f32 %v252_v37, %v1492_v43  ;;  %v749_v45 = vmul.f32 %v747_v40, %v1492_v43  ;;  %v724_v51 = vadd.f32 %v722_v36, %v702_v41 }
 0x129   :  { %v253_v48 = vmul.f32 %v251_v42, %v1492_v43 }
 0x12a   :  { %v256_v52 = vadd.f32 %v254_v46, %v1533_v18  ;;  %v751_v53 = vadd.f32 %v749_v45, %v1533_v18  ;;  %v746_v55 = vadd.f32 %v744_v44, %v724_v51 }
 0x12b   :  { %v255_v54 = vadd.f32 %v253_v48, %v1533_v18 }
 0x12c   :  { %v258_v56 = vmax.f32 %v256_v52, 0.0  ;;  %v753_v57 = vmax.f32 %v751_v53, 0.0  ;;  %v748_v0 = vmul.f32 %v746_v55, %v1492_v43 }
 0x12d   :  { %v257_v60 = vmax.f32 %v255_v54, 0.0 }
 0x12e   :  { %v266_v58 = vrot.slane %v258_v56, %v1542_v26  ;;  %v278_v59 = vrot.slane %v258_v56, %v1544_v27  ;;  %v761_v61 = vrot.slane %v753_v57, %v1542_v26  ;;  %v773_v62 = vrot.slane %v753_v57, %v1544_v27 }
 0x12f   :  { %v290_v2 = vrot.slane %v258_v56, %v1546_v28  ;;  %v302_v47 = vrot.slane %v258_v56, %v1548_v33  ;;  %v785_v4 = vrot.slane %v753_v57, %v1546_v28  ;;  %v262_v7 = vrot.slane %v257_v60, %v1542_v26 }
 0x130   :  { %v268_v1 = vmul.f32 %v266_v58, %v1538_v24  ;;  %v763_v3 = vmul.f32 %v761_v61, %v1538_v24  ;;  %v280_v6 = vmul.f32 %v278_v59, %v1555_v39  ;;  %v274_v11 = vrot.slane %v257_v60, %v1544_v27 }
 0x131   :  { %v775_v13 = vmul.f32 %v773_v62, %v1555_v39  ;;  %v797_v14 = vrot.slane %v753_v57, %v1548_v33  ;;  %v750_v15 = vadd.f32 %v748_v0, %v1533_v18  ;;  %v292_v10 = vmul.f32 %v290_v2, %v1577_v63 }
 0x132   :  { %v270_v5 = vadd.f32 %v268_v1, %v1553_v38  ;;  %v765_v12 = vadd.f32 %v763_v3, %v1553_v38  ;;  %v267_v50 = vmul.f32 %v262_v7, %v1538_v24  ;;  %v286_v8 = vrot.slane %v257_v60, %v1546_v28 }
 0x133   :  { %v304_v19 = vmul.f32 %v302_v47, %v1599_v21  ;;  %v787_v22 = vmul.f32 %v785_v4, %v1577_v63  ;;  %v752_v23 = vmax.f32 %v750_v15, 0.0  ;;  %v279_v29 = vmul.f32 %v274_v11, %v1555_v39 }
 0x134   :  { %v282_v9 = vadd.f32 %v280_v6, %v270_v5  ;;  %v777_v20 = vadd.f32 %v775_v13, %v765_v12  ;;  %v269_v49 = vadd.f32 %v267_v50, %v1553_v38  ;;  %v298_v30 = vrot.slane %v257_v60, %v1548_v33 }
 0x135   :  { %v799_v32 = vmul.f32 %v797_v14, %v1599_v21  ;;  %v757_v35 = vrot.slane %v752_v23, %v1542_v26  ;;  %v769_v36 = vrot.slane %v752_v23, %v1544_v27  ;;  %v291_v40 = vmul.f32 %v286_v8, %v1577_v63 }
 0x136   :  { %v294_v34 = vadd.f32 %v292_v10, %v282_v9  ;;  %v789_v31 = vadd.f32 %v787_v22, %v777_v20  ;;  %v281_v37 = vadd.f32 %v279_v29, %v269_v49  ;;  %v303_v45 = vmul.f32 %v298_v30, %v1599_v21 }
 0x137   :  { %v762_v42 = vmul.f32 %v757_v35, %v1538_v24  ;;  %v781_v48 = vrot.slane %v752_v23, %v1546_v28  ;;  %v774_v53 = vmul.f32 %v769_v36, %v1555_v39  ;;  %v793_v60 = vrot.slane %v752_v23, %v1548_v33 }
 0x138   :  { %v306_v25 = vadd.f32 %v304_v19, %v294_v34  ;;  %v801_v41 = vadd.f32 %v799_v32, %v789_v31  ;;  %v293_v46 = vadd.f32 %v291_v40, %v281_v37  ;;  %v362_v40 = vcombine.high %v1527_v16, %v1527_v16 }
 0x139   :  { %v764_v52 = vadd.f32 %v762_v42, %v1553_v38  ;;  %v786_v59 = vmul.f32 %v781_v48, %v1577_v63  ;;  %v798_v6 = vmul.f32 %v793_v60, %v1599_v21 }
 0x13a   :  { %v308_v44 = vmul.f32 %v306_v25, %v1492_v43  ;;  %v803_v51 = vmul.f32 %v801_v41, %v1492_v43  ;;  %v305_v55 = vadd.f32 %v303_v45, %v293_v46  ;;  %v857_v46 = vcombine.high %v1530_v17, %v1530_v17 }
 0x13b   :  { %v776_v57 = vadd.f32 %v774_v53, %v764_v52 }
 0x13c   :  { %v310_v54 = vadd.f32 %v308_v44, %v1533_v18  ;;  %v805_v56 = vadd.f32 %v803_v51, %v1533_v18  ;;  %v307_v1 = vmul.f32 %v305_v55, %v1492_v43 }
 0x13d   :  { %v788_v2 = vadd.f32 %v786_v59, %v776_v57 }
 0x13e   :  { %v312_v58 = vmax.f32 %v310_v54, 0.0  ;;  %v807_v61 = vmax.f32 %v805_v56, 0.0  ;;  %v309_v15 = vadd.f32 %v307_v1, %v1533_v18 }
 0x13f   :  { %v800_v9 = vadd.f32 %v798_v6, %v788_v2 }
 0x140   :  { %v320_v62 = vrot.slane %v312_v58, %v1542_v26  ;;  %v332_v0 = vrot.slane %v312_v58, %v1544_v27  ;;  %v815_v47 = vrot.slane %v807_v61, %v1542_v26  ;;  %v827_v3 = vrot.slane %v807_v61, %v1544_v27 }
 0x141   :  { %v344_v5 = vrot.slane %v312_v58, %v1546_v28  ;;  %v356_v7 = vrot.slane %v312_v58, %v1548_v33  ;;  %v839_v12 = vrot.slane %v807_v61, %v1546_v28  ;;  %v851_v8 = vrot.slane %v807_v61, %v1548_v33 }
 0x142   :  { %v322_v4 = vmul.f32 %v320_v62, %v1538_v24  ;;  %v817_v11 = vmul.f32 %v815_v47, %v1538_v24  ;;  %v334_v14 = vmul.f32 %v332_v0, %v1555_v39  ;;  %v829_v50 = vmul.f32 %v827_v3, %v1555_v39 }
 0x143   :  { %v346_v20 = vmul.f32 %v344_v5, %v1577_v63  ;;  %v311_v22 = vmax.f32 %v309_v15, 0.0  ;;  %v802_v23 = vmul.f32 %v800_v9, %v1492_v43  ;;  %v841_v49 = vmul.f32 %v839_v12, %v1577_v63 }
 0x144   :  { %v324_v13 = vadd.f32 %v322_v4, %v1553_v38  ;;  %v819_v10 = vadd.f32 %v817_v11, %v1553_v38  ;;  %v358_v30 = vmul.f32 %v356_v7, %v1599_v21  ;;  %v853_v36 = vmul.f32 %v851_v8, %v1599_v21 }
 0x145   :  { %v316_v31 = vrot.slane %v311_v22, %v1542_v26  ;;  %v328_v32 = vrot.slane %v311_v22, %v1544_v27  ;;  %v804_v25 = vadd.f32 %v802_v23, %v1533_v18  ;;  %v340_v42 = vrot.slane %v311_v22, %v1546_v28 }
 0x146   :  { %v336_v19 = vadd.f32 %v334_v14, %v324_v13  ;;  %v831_v34 = vadd.f32 %v829_v50, %v819_v10  ;;  %v352_v54 = vrot.slane %v311_v22, %v1548_v33 }
 0x147   :  { %v321_v41 = vmul.f32 %v316_v31, %v1538_v24  ;;  %v806_v45 = vmax.f32 %v804_v25, 0.0  ;;  %v333_v52 = vmul.f32 %v328_v32, %v1555_v39  ;;  %v345_v58 = vmul.f32 %v340_v42, %v1577_v63 }
 0x148   :  { %v348_v29 = vadd.f32 %v346_v20, %v336_v19  ;;  %v843_v35 = vadd.f32 %v841_v49, %v831_v34  ;;  %v357_v3 = vmul.f32 %v352_v54, %v1599_v21 }
 0x149   :  { %v323_v51 = vadd.f32 %v321_v41, %v1553_v38  ;;  %v811_v55 = vrot.slane %v806_v45, %v1542_v26  ;;  %v823_v59 = vrot.slane %v806_v45, %v1544_v27  ;;  %v835_v5 = vrot.slane %v806_v45, %v1546_v28 }
 0x14a   :  { %v360_v37 = vadd.f32 %v358_v30, %v348_v29  ;;  %v855_v44 = vadd.f32 %v853_v36, %v843_v35  ;;  %v847_v7 = vrot.slane %v806_v45, %v1548_v33 }
 0x14b   :  { %v335_v57 = vadd.f32 %v333_v52, %v323_v51  ;;  %v816_v61 = vmul.f32 %v811_v55, %v1538_v24  ;;  %v828_v4 = vmul.f32 %v823_v59, %v1555_v39  ;;  %v840_v8 = vmul.f32 %v835_v5, %v1577_v63 }
 0x14c   :  { %v1688_v48 = vadd.f32 %v362_v40, %v360_v37  ;;  %v1692_v53 = vadd.f32 %v857_v46, %v855_v44  ;;  %v852_v23 = vmul.f32 %v847_v7, %v1599_v21 }
 0x14d   :  { %v347_v0 = vadd.f32 %v345_v58, %v335_v57  ;;  %v818_v2 = vadd.f32 %v816_v61, %v1553_v38 }
 0x14e   :  { %v367_v56 = vmul.f32 %v1688_v48, %v1492_v43  ;;  %v862_v60 = vmul.f32 %v1692_v53, %v1492_v43 }
 0x14f   :  { %v359_v13 = vadd.f32 %v357_v3, %v347_v0  ;;  %v830_v14 = vadd.f32 %v828_v4, %v818_v2 }
 0x150   :  { %v369_v62 = vadd.f32 %v367_v56, %v1533_v18  ;;  %v864_v1 = vadd.f32 %v862_v60, %v1533_v18 }
 0x151   :  { %v1724_v29 = vadd.f32 %v359_v13, %v1527_v16  ;;  %v842_v30 = vadd.f32 %v840_v8, %v830_v14 }
 0x152   :  { %v371_v47 = vmax.f32 %v369_v62, 0.0  ;;  %v866_v6 = vmax.f32 %v864_v1, 0.0 }
 0x153   :  { %v366_v37 = vmul.f32 %v1724_v29, %v1492_v43  ;;  %v854_v40 = vadd.f32 %v852_v23, %v842_v30 }
 0x154   :  { %v379_v11 = vrot.slane %v371_v47, %v1542_v26  ;;  %v391_v12 = vrot.slane %v371_v47, %v1544_v27  ;;  %v874_v15 = vrot.slane %v866_v6, %v1542_v26  ;;  %v886_v9 = vrot.slane %v866_v6, %v1544_v27 }
 0x155   :  { %v403_v50 = vrot.slane %v371_v47, %v1546_v28  ;;  %v415_v19 = vrot.slane %v371_v47, %v1548_v33  ;;  %v898_v22 = vrot.slane %v866_v6, %v1546_v28  ;;  %v910_v35 = vrot.slane %v866_v6, %v1548_v33 }
 0x156   :  { %v381_v10 = vmul.f32 %v379_v11, %v1538_v24  ;;  %v876_v20 = vmul.f32 %v874_v15, %v1538_v24  ;;  %v393_v49 = vmul.f32 %v391_v12, %v1555_v39  ;;  %v888_v32 = vmul.f32 %v886_v9, %v1555_v39 }
 0x157   :  { %v405_v25 = vmul.f32 %v403_v50, %v1577_v63  ;;  %v900_v42 = vmul.f32 %v898_v22, %v1577_v63  ;;  %v417_v16 = vmul.f32 %v415_v19, %v1599_v21  ;;  %v368_v46 = vadd.f32 %v366_v37, %v1533_v18 }
 0x158   :  { %v383_v34 = vadd.f32 %v381_v10, %v1553_v38  ;;  %v878_v31 = vadd.f32 %v876_v20, %v1553_v38  ;;  %v1736_v45 = vadd.f32 %v854_v40, %v1530_v17  ;;  %v912_v52 = vmul.f32 %v910_v35, %v1599_v21 }
 0x159   :  { %v370_v55 = vmax.f32 %v368_v46, 0.0 }
 0x15a   :  { %v395_v36 = vadd.f32 %v393_v49, %v383_v34  ;;  %v890_v41 = vadd.f32 %v888_v32, %v878_v31  ;;  %v861_v56 = vmul.f32 %v1736_v45, %v1492_v43 }
 0x15b   :  { %v375_v59 = vrot.slane %v370_v55, %v1542_v26  ;;  %v387_v61 = vrot.slane %v370_v55, %v1544_v27  ;;  %v399_v3 = vrot.slane %v370_v55, %v1546_v28  ;;  %v411_v4 = vrot.slane %v370_v55, %v1548_v33 }
 0x15c   :  { %v407_v44 = vadd.f32 %v405_v25, %v395_v36  ;;  %v902_v51 = vadd.f32 %v900_v42, %v890_v41  ;;  %v863_v17 = vadd.f32 %v861_v56, %v1533_v18 }
 0x15d   :  { %v380_v0 = vmul.f32 %v375_v59, %v1538_v24  ;;  %v392_v6 = vmul.f32 %v387_v61, %v1555_v39  ;;  %v404_v8 = vmul.f32 %v399_v3, %v1577_v63  ;;  %v416_v19 = vmul.f32 %v411_v4, %v1599_v21 }
 0x15e   :  { %v419_v54 = vadd.f32 %v417_v16, %v407_v44  ;;  %v914_v57 = vadd.f32 %v912_v52, %v902_v51  ;;  %v865_v2 = vmax.f32 %v863_v17, 0.0 }
 0x15f   :  { %v382_v12 = vadd.f32 %v380_v0, %v1553_v38 }
 0x160   :  { %v421_v58 = vmul.f32 %v419_v54, %v1492_v43  ;;  %v916_v60 = vmul.f32 %v914_v57, %v1492_v43  ;;  %v870_v13 = vrot.slane %v865_v2, %v1542_v26  ;;  %v882_v10 = vrot.slane %v865_v2, %v1544_v27 }
 0x161   :  { %v894_v20 = vrot.slane %v865_v2, %v1546_v28  ;;  %v394_v32 = vadd.f32 %v392_v6, %v382_v12  ;;  %v906_v16 = vrot.slane %v865_v2, %v1548_v33 }
 0x162   :  { %v423_v62 = vadd.f32 %v421_v58, %v1533_v18  ;;  %v918_v1 = vadd.f32 %v916_v60, %v1533_v18  ;;  %v875_v35 = vmul.f32 %v870_v13, %v1538_v24  ;;  %v887_v40 = vmul.f32 %v882_v10, %v1555_v39 }
 0x163   :  { %v406_v42 = vadd.f32 %v404_v8, %v394_v32  ;;  %v899_v57 = vmul.f32 %v894_v20, %v1577_v63 }
 0x164   :  { %v425_v47 = vmax.f32 %v423_v62, 0.0  ;;  %v920_v5 = vmax.f32 %v918_v1, 0.0  ;;  %v877_v44 = vadd.f32 %v875_v35, %v1553_v38  ;;  %v911_v62 = vmul.f32 %v906_v16, %v1599_v21 }
 0x165   :  { %v418_v55 = vadd.f32 %v416_v19, %v406_v42 }
 0x166   :  { %v433_v7 = vrot.slane %v425_v47, %v1542_v26  ;;  %v445_v11 = vrot.slane %v425_v47, %v1544_v27  ;;  %v457_v14 = vrot.slane %v425_v47, %v1546_v28  ;;  %v928_v15 = vrot.slane %v920_v5, %v1542_v26 }
 0x167   :  { %v940_v9 = vrot.slane %v920_v5, %v1544_v27  ;;  %v469_v22 = vrot.slane %v425_v47, %v1548_v33  ;;  %v952_v34 = vrot.slane %v920_v5, %v1546_v28  ;;  %v964_v49 = vrot.slane %v920_v5, %v1548_v33 }
 0x168   :  { %v435_v50 = vmul.f32 %v433_v7, %v1538_v24  ;;  %v930_v23 = vmul.f32 %v928_v15, %v1538_v24  ;;  %v447_v31 = vmul.f32 %v445_v11, %v1555_v39  ;;  %v459_v36 = vmul.f32 %v457_v14, %v1577_v63 }
 0x169   :  { %v942_v37 = vmul.f32 %v940_v9, %v1555_v39  ;;  %v471_v46 = vmul.f32 %v469_v22, %v1599_v21  ;;  %v954_v52 = vmul.f32 %v952_v34, %v1577_v63  ;;  %v889_v56 = vadd.f32 %v887_v40, %v877_v44 }
 0x16a   :  { %v437_v30 = vadd.f32 %v435_v50, %v1553_v38  ;;  %v932_v25 = vadd.f32 %v930_v23, %v1553_v38  ;;  %v966_v59 = vmul.f32 %v964_v49, %v1599_v21  ;;  %v420_v61 = vmul.f32 %v418_v55, %v1492_v43 }
 0x16b   :  { %v901_v17 = vadd.f32 %v899_v57, %v889_v56 }
 0x16c   :  { %v449_v41 = vadd.f32 %v447_v31, %v437_v30  ;;  %v944_v51 = vadd.f32 %v942_v37, %v932_v25  ;;  %v422_v2 = vadd.f32 %v420_v61, %v1533_v18 }
 0x16d   :  { %v913_v47 = vadd.f32 %v911_v62, %v901_v17 }
 0x16e   :  { %v461_v54 = vadd.f32 %v459_v36, %v449_v41  ;;  %v956_v58 = vadd.f32 %v954_v52, %v944_v51  ;;  %v424_v5 = vmax.f32 %v422_v2, 0.0 }
 0x16f   :  { %v915_v7 = vmul.f32 %v913_v47, %v1492_v43 }
 0x170   :  { %v473_v60 = vadd.f32 %v471_v46, %v461_v54  ;;  %v968_v0 = vadd.f32 %v966_v59, %v956_v58  ;;  %v429_v15 = vrot.slane %v424_v5, %v1542_v26  ;;  %v441_v20 = vrot.slane %v424_v5, %v1544_v27 }
 0x171   :  { %v917_v50 = vadd.f32 %v915_v7, %v1533_v18  ;;  %v453_v34 = vrot.slane %v424_v5, %v1546_v28  ;;  %v465_v49 = vrot.slane %v424_v5, %v1548_v33 }
 0x172   :  { %v475_v1 = vmul.f32 %v473_v60, %v1492_v43  ;;  %v970_v3 = vmul.f32 %v968_v0, %v1492_v43  ;;  %v434_v35 = vmul.f32 %v429_v15, %v1538_v24  ;;  %v446_v16 = vmul.f32 %v441_v20, %v1555_v39 }
 0x173   :  { %v919_v40 = vmax.f32 %v917_v50, 0.0  ;;  %v458_v58 = vmul.f32 %v453_v34, %v1577_v63 }
 0x174   :  { %v477_v4 = vadd.f32 %v475_v1, %v1533_v18  ;;  %v972_v6 = vadd.f32 %v970_v3, %v1533_v18  ;;  %v436_v44 = vadd.f32 %v434_v35, %v1553_v38  ;;  %v470_v1 = vmul.f32 %v465_v49, %v1599_v21 }
 0x175   :  { %v924_v52 = vrot.slane %v919_v40, %v1542_v26  ;;  %v936_v54 = vrot.slane %v919_v40, %v1544_v27  ;;  %v948_v17 = vrot.slane %v919_v40, %v1546_v28 }
 0x176   :  { %v479_v11 = vmax.f32 %v477_v4, 0.0  ;;  %v974_v12 = vmax.f32 %v972_v6, 0.0  ;;  %v448_v57 = vadd.f32 %v446_v16, %v436_v44  ;;  %v960_v4 = vrot.slane %v919_v40, %v1548_v33 }
 0x177   :  { %v929_v61 = vmul.f32 %v924_v52, %v1538_v24  ;;  %v941_v3 = vmul.f32 %v936_v54, %v1555_v39 }
 0x178   :  { %v487_v13 = vrot.slane %v479_v11, %v1542_v26  ;;  %v499_v14 = vrot.slane %v479_v11, %v1544_v27  ;;  %v982_v9 = vrot.slane %v974_v12, %v1542_v26  ;;  %v994_v10 = vrot.slane %v974_v12, %v1544_v27 }
 0x179   :  { %v511_v19 = vrot.slane %v479_v11, %v1546_v28  ;;  %v1006_v23 = vrot.slane %v974_v12, %v1546_v28  ;;  %v523_v32 = vrot.slane %v479_v11, %v1548_v33  ;;  %v1018_v37 = vrot.slane %v974_v12, %v1548_v33 }
 0x17a   :  { %v489_v8 = vmul.f32 %v487_v13, %v1538_v24  ;;  %v984_v22 = vmul.f32 %v982_v9, %v1538_v24  ;;  %v501_v31 = vmul.f32 %v499_v14, %v1555_v39  ;;  %v996_v25 = vmul.f32 %v994_v10, %v1555_v39 }
 0x17b   :  { %v513_v42 = vmul.f32 %v511_v19, %v1577_v63  ;;  %v1008_v51 = vmul.f32 %v1006_v23, %v1577_v63  ;;  %v525_v56 = vmul.f32 %v523_v32, %v1599_v21  ;;  %v1020_v60 = vmul.f32 %v1018_v37, %v1599_v21 }
 0x17c   :  { %v491_v30 = vadd.f32 %v489_v8, %v1553_v38  ;;  %v986_v36 = vadd.f32 %v984_v22, %v1553_v38  ;;  %v460_v0 = vadd.f32 %v458_v58, %v448_v57  ;;  %v931_v47 = vadd.f32 %v929_v61, %v1553_v38 }
 0x17d   :  { %v953_v12 = vmul.f32 %v948_v17, %v1577_v63  ;;  %v965_v15 = vmul.f32 %v960_v4, %v1599_v21 }
 0x17e   :  { %v503_v41 = vadd.f32 %v501_v31, %v491_v30  ;;  %v998_v46 = vadd.f32 %v996_v25, %v986_v36  ;;  %v472_v6 = vadd.f32 %v470_v1, %v460_v0  ;;  %v943_v11 = vadd.f32 %v941_v3, %v931_v47 }
 0x180   :  { %v515_v55 = vadd.f32 %v513_v42, %v503_v41  ;;  %v1010_v59 = vadd.f32 %v1008_v51, %v998_v46  ;;  %v474_v13 = vmul.f32 %v472_v6, %v1492_v43  ;;  %v955_v14 = vadd.f32 %v953_v12, %v943_v11 }
 0x182   :  { %v527_v62 = vadd.f32 %v525_v56, %v515_v55  ;;  %v1022_v2 = vadd.f32 %v1020_v60, %v1010_v59  ;;  %v476_v9 = vadd.f32 %v474_v13, %v1533_v18  ;;  %v967_v10 = vadd.f32 %v965_v15, %v955_v14 }
 0x184   :  { %v529_v5 = vadd.f32 %v527_v62, %v1688_v48  ;;  %v1024_v7 = vadd.f32 %v1022_v2, %v1692_v53  ;;  %v478_v50 = vmax.f32 %v476_v9, 0.0  ;;  %v969_v8 = vmul.f32 %v967_v10, %v1492_v43 }
 0x186   :  { %594 = vmatprep.mubr.f32.mxu0 %v529_v5  ;;  %1089 = vmatprep.mubr.f32.mxu1 %v1024_v7  ;;  %v483_v48 = vrot.slane %v478_v50, %v1542_v26  ;;  %v495_v53 = vrot.slane %v478_v50, %v1544_v27  ;;  %v971_v19 = vadd.f32 %v969_v8, %v1533_v18 }
 0x187   :  { %v507_v22 = vrot.slane %v478_v50, %v1546_v28  ;;  %v519_v30 = vrot.slane %v478_v50, %v1548_v33 }
 0x188   :  { %v488_v20 = vmul.f32 %v483_v48, %v1538_v24  ;;  %v973_v23 = vmax.f32 %v971_v19, 0.0  ;;  %v500_v49 = vmul.f32 %v495_v53, %v1555_v39 }
 0x189   :  { %v512_v35 = vmul.f32 %v507_v22, %v1577_v63  ;;  %v524_v37 = vmul.f32 %v519_v30, %v1599_v21 }
 0x18a   :  { %v490_v34 = vadd.f32 %v488_v20, %v1553_v38  ;;  %v978_v31 = vrot.slane %v973_v23, %v1542_v26  ;;  %v990_v43 = vrot.slane %v973_v23, %v1544_v27  ;;  %v1002_v36 = vrot.slane %v973_v23, %v1546_v28 }
 0x18b   :  { %v1014_v42 = vrot.slane %v973_v23, %v1548_v33 }
 0x18c   :  { %v502_v32 = vadd.f32 %v500_v49, %v490_v34  ;;  %v983_v18 = vmul.f32 %v978_v31, %v1538_v24  ;;  %v995_v41 = vmul.f32 %v990_v43, %v1555_v39  ;;  %v1007_v27 = vmul.f32 %v1002_v36, %v1577_v63 }
 0x18d   :  { %v1019_v24 = vmul.f32 %v1014_v42, %v1599_v21 }
 0x18e   :  { %v514_v25 = vadd.f32 %v512_v35, %v502_v32  ;;  %v985_v40 = vadd.f32 %v983_v18, %v1553_v38 }
 0x190   :  { %v526_v44 = vadd.f32 %v524_v37, %v514_v25  ;;  %v997_v26 = vadd.f32 %v995_v41, %v985_v40 }
 0x192   :  { %v528_v16 = vadd.f32 %v526_v44, %v1724_v29  ;;  %v1009_v46 = vadd.f32 %v1007_v27, %v997_v26 }
 0x194   :  { %595 = vmatmul.mubr.f32.vlgmr.msra.gmra.mrb[0].mxu0 %v528_v16  ;;  %v1021_v28 = vadd.f32 %v1019_v24, %v1009_v46 }
 0x196   :  { %v1023_v51 = vadd.f32 %v1021_v28, %v1736_v45 }
 0x198   :  { %1090 = vmatmul.mubr.f32.vlgmr.msra.gmra.mrb[0].mxu1 %v1023_v51 }
 0x267   :  { %v1135_v52 = vpop.f32.mrb[0].mxu0 }
 0x268   :  { %v1136_v38 = vpop.f32.mrb[1].mxu0 }
 0x269   :  { %v1137_v39 = vadd.f32 %v1136_v38, %v1135_v52 }
 0x26b   :  { %601 = vst.msk [vmem:[%s1861_s3] sm:$0xf] %vm600_vm9, %v1137_v39  ;;  %v1170_v33 = vpop.f32.mrb[0].mxu1 }
 0x26c   :  { %v1171_v63 = vpop.f32.mrb[1].mxu1 }
 0x26d   :  { %v1172_v54 = vadd.f32 %v1171_v63, %v1170_v33 }
 0x26f   :  { %1102 = vst.msk [vmem:[%s1861_s3 + $0x4] sm:$0xf] %vm600_vm9, %v1172_v54 }

</bundles_post_ra>
